<compile_context>
chip_gen: v7x
topology: tpu7x:2x2x1
jax: 0.10.0
libtpu: 0.0.40
codegen_flags: <defaults>
</compile_context>

<pallas_src>
import jax
import jax.numpy as jnp
from jax.experimental import pallas as pl
from jax.experimental.pallas import tpu as pltpu


# ----------------------------------------------------------------------------
# Fused conv1 -> conv2 -> maxpool kernel (single grid step, batch folded in M).
# ----------------------------------------------------------------------------
def _conv3_fused_kernel(x_ref, w1_ref, b1_ref, w2_ref, b2_ref, o_ref,
                        pad_ref, pool_ref):
    # x_ref   : (N, H, W, Cin)         NHWC input
    # w1_ref  : (4*C, C)               tap-concatenated conv1 weights (Cin 0-padded to C)
    # b1_ref  : (1, C)
    # w2_ref  : (4*C, C)               tap-concatenated conv2 weights
    # b2_ref  : (1, C)
    # o_ref   : (N*(H//2)*(W//2), C)   flat pooled output, row = (n, i, j)
    # pad_ref : (N, H+2, W+2, C)       VMEM halo scratch, reused by both convs
    # pool_ref: (N*(H//2)*W, C)        VMEM scratch for the strided W-pool
    N, H, W, Cin = x_ref.shape
    C = pad_ref.shape[-1]
    Hh, Wh = H // 2, W // 2
    M = N * H * W

    # Zero once: the 1-pixel border stays zero for both convs (pad=1 halo).
    pad_ref[...] = jnp.zeros_like(pad_ref)
    # conv1 input occupies channels [:Cin]; channels [Cin:] stay zero and the
    # matching conv1 weight rows are zero, so they contribute nothing.
    pad_ref[:, 1:H + 1, 1:W + 1, :Cin] = x_ref[...]

    def dilated_conv2x2(w_ref, b_ref):
        # output (h, w) reads padded input at (h + 2*kh, w + 2*kw), kh/kw in {0,1}.
        # Tap-concatenated im2col: LHS (M, 4*C) -> single MXU matmul (K = 512).
        taps = []
        for kh in range(2):
            for kw in range(2):
                taps.append(
                    pad_ref[:, 2 * kh:2 * kh + H, 2 * kw:2 * kw + W, :]
                    .reshape(M, C))
        lhs = jnp.concatenate(taps, axis=-1)                       # (M, 4*C)
        return jnp.dot(lhs, w_ref[...],
                       preferred_element_type=jnp.float32) + b_ref[...]

    h1 = dilated_conv2x2(w1_ref, b1_ref)                           # (M, C) f32
    # conv2 halo: overwrite the interior with conv1's output; border stays 0.
    pad_ref[:, 1:H + 1, 1:W + 1, :] = h1.reshape(N, H, W, C)
    h2 = dilated_conv2x2(w2_ref, b2_ref)                           # (M, C) f32

    # ---- fused MaxPool2d(2, 2), vectorised ----
    # H-pool: rows of h2 are ordered (n, h, w); pairing h row-blocks is a max
    # of whole (W, C) = (8, 128) tiles (pure vreg picks, no relayout).
    h2v = h2.reshape(N * H, W, C)
    hp = jnp.stack(
        [jnp.maximum(h2v[2 * p], h2v[2 * p + 1]) for p in range(N * Hh)],
        axis=0)                                                    # (N*Hh, W, C)
    pool_ref[...] = hp.reshape(N * Hh * W, C)
    # W-pool: even/odd sublane-strided reads + ONE lane-dense full-tile store.
    ev = pool_ref[pl.ds(0, N * Hh * Wh, stride=2), :]
    od = pool_ref[pl.ds(1, N * Hh * Wh, stride=2), :]
    o_ref[...] = jnp.maximum(ev, od).astype(o_ref.dtype)


def conv3_forward(x_nchw, params):
    N, Cin, H, W = x_nchw.shape
    C = params["w1"].shape[1]                    # 128 (out channels / padded in channels)
    Hh, Wh = H // 2, W // 2
    x = jnp.transpose(x_nchw, (0, 2, 3, 1))      # NCHW -> NHWC (glue)

    out_flat = pl.pallas_call(
        _conv3_fused_kernel,
        out_shape=jax.ShapeDtypeStruct((N * Hh * Wh, C), x.dtype),
        grid_spec=pltpu.PrefetchScalarGridSpec(
            num_scalar_prefetch=0,
            grid=(1,),
            in_specs=[
                pl.BlockSpec((N, H, W, Cin), lambda i: (0, 0, 0, 0)),
                pl.BlockSpec(params["w1"].shape, lambda i: (0, 0)),
                pl.BlockSpec((1, C), lambda i: (0, 0)),
                pl.BlockSpec(params["w2"].shape, lambda i: (0, 0)),
                pl.BlockSpec((1, C), lambda i: (0, 0)),
            ],
            out_specs=pl.BlockSpec((N * Hh * Wh, C), lambda i: (0, 0)),
            scratch_shapes=[
                pltpu.VMEM((N, H + 2, W + 2, C), jnp.float32),   # halo scratch
                pltpu.VMEM((N * Hh * W, C), jnp.float32),        # pool scratch
            ]),
        compiler_params=pltpu.CompilerParams(
            dimension_semantics=("arbitrary",)),
    )(x, params["w1"], params["b1"].reshape(1, C),
      params["w2"], params["b2"].reshape(1, C))

    # flat (n, i, j) rows -> NCHW (layout plumbing only, done by XLA)
    return jnp.transpose(out_flat.reshape(N, Hh, Wh, C), (0, 3, 1, 2))


# ----------------------------------------------------------------------------
# Weight prep: OIHW -> tap-concatenated (4*C, Cout), tap index = kh*2 + kw.
# Input channels are zero-padded to C so every tap block is 128-lane aligned.
# ----------------------------------------------------------------------------
def _prep_conv_weight(w_oihw, c_pad):
    cout, cin = w_oihw.shape[0], w_oihw.shape[1]
    w = jnp.transpose(w_oihw, (2, 3, 1, 0)).reshape(4, cin, cout)
    w = jnp.pad(w, ((0, 0), (0, c_pad - cin), (0, 0)))
    return w.reshape(4 * c_pad, cout)


# ----------------------------------------------------------------------------
# Pure-XLA reference (for self-check only).
# ----------------------------------------------------------------------------
def _reference_forward(x, w1, b1, w2, b2):
    dn = ("NCHW", "OIHW", "NCHW")
    h = jax.lax.conv_general_dilated(
        x, w1, window_strides=(1, 1), padding=((1, 1), (1, 1)),
        rhs_dilation=(2, 2), dimension_numbers=dn) + b1[None, :, None, None]
    h = jax.lax.conv_general_dilated(
        h, w2, window_strides=(1, 1), padding=((1, 1), (1, 1)),
        rhs_dilation=(2, 2), dimension_numbers=dn) + b2[None, :, None, None]
    return jax.lax.reduce_window(
        h, -jnp.inf, jax.lax.max,
        window_dimensions=(1, 1, 2, 2), window_strides=(1, 1, 2, 2),
        padding="VALID")


if __name__ == "__main__":
    key = jax.random.PRNGKey(0)
    k1, k2, k3, k4, k5 = jax.random.split(key, 5)

    # Deterministic parameter init (PyTorch default uniform bound = 1/sqrt(fan_in)).
    Cin1, Cout1, Cout2 = 64, 128, 128
    bnd1 = 1.0 / (Cin1 * 4) ** 0.5
    bnd2 = 1.0 / (Cout1 * 4) ** 0.5
    w1 = jax.random.uniform(k1, (Cout1, Cin1, 2, 2), jnp.float32, -bnd1, bnd1)
    b1 = jax.random.uniform(k2, (Cout1,), jnp.float32, -bnd1, bnd1)
    w2 = jax.random.uniform(k3, (Cout2, Cout1, 2, 2), jnp.float32, -bnd2, bnd2)
    b2 = jax.random.uniform(k4, (Cout2,), jnp.float32, -bnd2, bnd2)

    params = {
        "w1": _prep_conv_weight(w1, 128), "b1": b1,
        "w2": _prep_conv_weight(w2, 128), "b2": b2,
    }

    # Small input consistent with the module: N=2, C=64 (fixed by Conv3), 8x8 spatial.
    x = jax.random.normal(k5, (2, 64, 8, 8), jnp.float32)

    out = jax.block_until_ready(conv3_forward(x, params))
    assert out.shape == (2, 128, 4, 4), out.shape

    ref = jax.block_until_ready(_reference_forward(x, w1, b1, w2, b2))
    assert jnp.allclose(out, ref, atol=1e-3, rtol=1e-3), (
        float(jnp.max(jnp.abs(out - ref))))

    print("KERNEL_OK")
</pallas_src>

<mosaic_0001>
module attributes {stable_mosaic.version = 11 : i64} {
  func.func @_conv3_fused_kernel(%arg0: i32, %arg1: memref<2x8x8x64xf32, #tpu.memory_space<vmem>>, %arg2: memref<512x128xf32, #tpu.memory_space<vmem>>, %arg3: memref<1x128xf32, #tpu.memory_space<vmem>>, %arg4: memref<512x128xf32, #tpu.memory_space<vmem>>, %arg5: memref<1x128xf32, #tpu.memory_space<vmem>>, %arg6: memref<32x128xf32, #tpu.memory_space<vmem>>, %arg7: memref<2x10x10x128xf32, #tpu.memory_space<vmem>>, %arg8: memref<64x128xf32, #tpu.memory_space<vmem>>) attributes {dimension_semantics = [#tpu.dimension_semantics<arbitrary>], iteration_bounds = array<i64: 1>, scalar_prefetch = 0 : i64, scratch_operands = 2 : i64, tpu.core_type = #tpu.core_type<tc>, window_params = [{pipeline_mode = #tpu.pipeline_mode<synchronous>, transform_indices = @transform_0, window_bounds = array<i64: 2, 8, 8, 64>}, {pipeline_mode = #tpu.pipeline_mode<synchronous>, transform_indices = @transform_1, window_bounds = array<i64: 512, 128>}, {pipeline_mode = #tpu.pipeline_mode<synchronous>, transform_indices = @transform_2, window_bounds = array<i64: 1, 128>}, {pipeline_mode = #tpu.pipeline_mode<synchronous>, transform_indices = @transform_3, window_bounds = array<i64: 512, 128>}, {pipeline_mode = #tpu.pipeline_mode<synchronous>, transform_indices = @transform_4, window_bounds = array<i64: 1, 128>}, {pipeline_mode = #tpu.pipeline_mode<synchronous>, transform_indices = @transform_5, window_bounds = array<i64: 32, 128>}]} {
    %cst = arith.constant 0.000000e+00 : f32
    %0 = vector.broadcast %cst : f32 to vector<2x10x10x128xf32>
    %c0 = arith.constant 0 : index
    %c0_0 = arith.constant 0 : index
    %c0_1 = arith.constant 0 : index
    %c0_2 = arith.constant 0 : index
    %1 = vector.load %arg7[%c0, %c0_0, %c0_1, %c0_2] : memref<2x10x10x128xf32, #tpu.memory_space<vmem>>, vector<2x10x10x128xf32>
    tpu.vector_store %arg7[%c0, %c0_0, %c0_1, %c0_2], %0 {strides = array<i32>} : memref<2x10x10x128xf32, #tpu.memory_space<vmem>>, vector<2x10x10x128xf32>,
    %c0_3 = arith.constant 0 : index
    %c0_4 = arith.constant 0 : index
    %c0_5 = arith.constant 0 : index
    %c0_6 = arith.constant 0 : index
    %2 = vector.load %arg1[%c0_3, %c0_4, %c0_5, %c0_6] : memref<2x8x8x64xf32, #tpu.memory_space<vmem>>, vector<2x8x8x64xf32>
    %c0_7 = arith.constant 0 : index
    %c1 = arith.constant 1 : index
    %c1_8 = arith.constant 1 : index
    %c0_9 = arith.constant 0 : index
    %3 = vector.load %arg7[%c0_7, %c1, %c1_8, %c0_9] : memref<2x10x10x128xf32, #tpu.memory_space<vmem>>, vector<2x8x8x64xf32>
    tpu.vector_store %arg7[%c0_7, %c1, %c1_8, %c0_9], %2 {strides = array<i32>} : memref<2x10x10x128xf32, #tpu.memory_space<vmem>>, vector<2x8x8x64xf32>,
    %c0_10 = arith.constant 0 : index
    %c0_11 = arith.constant 0 : index
    %c0_12 = arith.constant 0 : index
    %c0_13 = arith.constant 0 : index
    %4 = vector.load %arg7[%c0_10, %c0_11, %c0_12, %c0_13] : memref<2x10x10x128xf32, #tpu.memory_space<vmem>>, vector<2x8x8x128xf32>
    %5 = vector.shape_cast %4 : vector<2x8x8x128xf32> to vector<128x128xf32>
    %c0_14 = arith.constant 0 : index
    %c0_15 = arith.constant 0 : index
    %c2 = arith.constant 2 : index
    %c0_16 = arith.constant 0 : index
    %6 = vector.load %arg7[%c0_14, %c0_15, %c2, %c0_16] : memref<2x10x10x128xf32, #tpu.memory_space<vmem>>, vector<2x8x8x128xf32>
    %7 = vector.shape_cast %6 : vector<2x8x8x128xf32> to vector<128x128xf32>
    %c0_17 = arith.constant 0 : index
    %c2_18 = arith.constant 2 : index
    %c0_19 = arith.constant 0 : index
    %c0_20 = arith.constant 0 : index
    %8 = vector.load %arg7[%c0_17, %c2_18, %c0_19, %c0_20] : memref<2x10x10x128xf32, #tpu.memory_space<vmem>>, vector<2x8x8x128xf32>
    %9 = vector.shape_cast %8 : vector<2x8x8x128xf32> to vector<128x128xf32>
    %c0_21 = arith.constant 0 : index
    %c2_22 = arith.constant 2 : index
    %c2_23 = arith.constant 2 : index
    %c0_24 = arith.constant 0 : index
    %10 = vector.load %arg7[%c0_21, %c2_22, %c2_23, %c0_24] : memref<2x10x10x128xf32, #tpu.memory_space<vmem>>, vector<2x8x8x128xf32>
    %11 = vector.shape_cast %10 : vector<2x8x8x128xf32> to vector<128x128xf32>
    %12 = tpu.concatenate %5, %7, %9, %11 in 1 : vector<128x128xf32>, vector<128x128xf32>, vector<128x128xf32>, vector<128x128xf32> -> vector<128x512xf32>
    %c0_25 = arith.constant 0 : index
    %c0_26 = arith.constant 0 : index
    %13 = vector.load %arg2[%c0_25, %c0_26] : memref<512x128xf32, #tpu.memory_space<vmem>>, vector<512x128xf32>
    %cst_27 = arith.constant dense<0.000000e+00> : vector<128x128xf32>
    %14 = tpu.matmul %12, %13, %cst_27 {dimension_numbers = #tpu.dot_dimension_numbers<[1], [0], [0], [1], [0, 0, 1, 1], [], []>} : vector<128x512xf32>, vector<512x128xf32>, vector<128x128xf32> -> vector<128x128xf32>
    %c0_28 = arith.constant 0 : index
    %c0_29 = arith.constant 0 : index
    %15 = vector.load %arg3[%c0_28, %c0_29] : memref<1x128xf32, #tpu.memory_space<vmem>>, vector<1x128xf32>
    %16 = vector.broadcast %15 : vector<1x128xf32> to vector<128x128xf32>
    %17 = arith.addf %14, %16 : vector<128x128xf32>
    %18 = vector.shape_cast %17 : vector<128x128xf32> to vector<2x8x8x128xf32>
    %c0_30 = arith.constant 0 : index
    %c1_31 = arith.constant 1 : index
    %c1_32 = arith.constant 1 : index
    %c0_33 = arith.constant 0 : index
    %19 = vector.load %arg7[%c0_30, %c1_31, %c1_32, %c0_33] : memref<2x10x10x128xf32, #tpu.memory_space<vmem>>, vector<2x8x8x128xf32>
    tpu.vector_store %arg7[%c0_30, %c1_31, %c1_32, %c0_33], %18 {strides = array<i32>} : memref<2x10x10x128xf32, #tpu.memory_space<vmem>>, vector<2x8x8x128xf32>,
    %c0_34 = arith.constant 0 : index
    %c0_35 = arith.constant 0 : index
    %c0_36 = arith.constant 0 : index
    %c0_37 = arith.constant 0 : index
    %20 = vector.load %arg7[%c0_34, %c0_35, %c0_36, %c0_37] : memref<2x10x10x128xf32, #tpu.memory_space<vmem>>, vector<2x8x8x128xf32>
    %21 = vector.shape_cast %20 : vector<2x8x8x128xf32> to vector<128x128xf32>
    %c0_38 = arith.constant 0 : index
    %c0_39 = arith.constant 0 : index
    %c2_40 = arith.constant 2 : index
    %c0_41 = arith.constant 0 : index
    %22 = vector.load %arg7[%c0_38, %c0_39, %c2_40, %c0_41] : memref<2x10x10x128xf32, #tpu.memory_space<vmem>>, vector<2x8x8x128xf32>
    %23 = vector.shape_cast %22 : vector<2x8x8x128xf32> to vector<128x128xf32>
    %c0_42 = arith.constant 0 : index
    %c2_43 = arith.constant 2 : index
    %c0_44 = arith.constant 0 : index
    %c0_45 = arith.constant 0 : index
    %24 = vector.load %arg7[%c0_42, %c2_43, %c0_44, %c0_45] : memref<2x10x10x128xf32, #tpu.memory_space<vmem>>, vector<2x8x8x128xf32>
    %25 = vector.shape_cast %24 : vector<2x8x8x128xf32> to vector<128x128xf32>
    %c0_46 = arith.constant 0 : index
    %c2_47 = arith.constant 2 : index
    %c2_48 = arith.constant 2 : index
    %c0_49 = arith.constant 0 : index
    %26 = vector.load %arg7[%c0_46, %c2_47, %c2_48, %c0_49] : memref<2x10x10x128xf32, #tpu.memory_space<vmem>>, vector<2x8x8x128xf32>
    %27 = vector.shape_cast %26 : vector<2x8x8x128xf32> to vector<128x128xf32>
    %28 = tpu.concatenate %21, %23, %25, %27 in 1 : vector<128x128xf32>, vector<128x128xf32>, vector<128x128xf32>, vector<128x128xf32> -> vector<128x512xf32>
    %c0_50 = arith.constant 0 : index
    %c0_51 = arith.constant 0 : index
    %29 = vector.load %arg4[%c0_50, %c0_51] : memref<512x128xf32, #tpu.memory_space<vmem>>, vector<512x128xf32>
    %cst_52 = arith.constant dense<0.000000e+00> : vector<128x128xf32>
    %30 = tpu.matmul %28, %29, %cst_52 {dimension_numbers = #tpu.dot_dimension_numbers<[1], [0], [0], [1], [0, 0, 1, 1], [], []>} : vector<128x512xf32>, vector<512x128xf32>, vector<128x128xf32> -> vector<128x128xf32>
    %c0_53 = arith.constant 0 : index
    %c0_54 = arith.constant 0 : index
    %31 = vector.load %arg5[%c0_53, %c0_54] : memref<1x128xf32, #tpu.memory_space<vmem>>, vector<1x128xf32>
    %32 = vector.broadcast %31 : vector<1x128xf32> to vector<128x128xf32>
    %33 = arith.addf %30, %32 : vector<128x128xf32>
    %34 = vector.shape_cast %33 : vector<128x128xf32> to vector<16x8x128xf32>
    %35 = vector.extract_strided_slice %34 {offsets = [0, 0, 0], sizes = [1, 8, 128], strides = [1, 1, 1]} : vector<16x8x128xf32> to vector<1x8x128xf32>
    %36 = vector.shape_cast %35 : vector<1x8x128xf32> to vector<8x128xf32>
    %37 = vector.extract_strided_slice %34 {offsets = [1, 0, 0], sizes = [1, 8, 128], strides = [1, 1, 1]} : vector<16x8x128xf32> to vector<1x8x128xf32>
    %38 = vector.shape_cast %37 : vector<1x8x128xf32> to vector<8x128xf32>
    %39 = arith.maximumf %36, %38 : vector<8x128xf32>
    %40 = vector.extract_strided_slice %34 {offsets = [2, 0, 0], sizes = [1, 8, 128], strides = [1, 1, 1]} : vector<16x8x128xf32> to vector<1x8x128xf32>
    %41 = vector.shape_cast %40 : vector<1x8x128xf32> to vector<8x128xf32>
    %42 = vector.extract_strided_slice %34 {offsets = [3, 0, 0], sizes = [1, 8, 128], strides = [1, 1, 1]} : vector<16x8x128xf32> to vector<1x8x128xf32>
    %43 = vector.shape_cast %42 : vector<1x8x128xf32> to vector<8x128xf32>
    %44 = arith.maximumf %41, %43 : vector<8x128xf32>
    %45 = vector.extract_strided_slice %34 {offsets = [4, 0, 0], sizes = [1, 8, 128], strides = [1, 1, 1]} : vector<16x8x128xf32> to vector<1x8x128xf32>
    %46 = vector.shape_cast %45 : vector<1x8x128xf32> to vector<8x128xf32>
    %47 = vector.extract_strided_slice %34 {offsets = [5, 0, 0], sizes = [1, 8, 128], strides = [1, 1, 1]} : vector<16x8x128xf32> to vector<1x8x128xf32>
    %48 = vector.shape_cast %47 : vector<1x8x128xf32> to vector<8x128xf32>
    %49 = arith.maximumf %46, %48 : vector<8x128xf32>
    %50 = vector.extract_strided_slice %34 {offsets = [6, 0, 0], sizes = [1, 8, 128], strides = [1, 1, 1]} : vector<16x8x128xf32> to vector<1x8x128xf32>
    %51 = vector.shape_cast %50 : vector<1x8x128xf32> to vector<8x128xf32>
    %52 = vector.extract_strided_slice %34 {offsets = [7, 0, 0], sizes = [1, 8, 128], strides = [1, 1, 1]} : vector<16x8x128xf32> to vector<1x8x128xf32>
    %53 = vector.shape_cast %52 : vector<1x8x128xf32> to vector<8x128xf32>
    %54 = arith.maximumf %51, %53 : vector<8x128xf32>
    %55 = vector.extract_strided_slice %34 {offsets = [8, 0, 0], sizes = [1, 8, 128], strides = [1, 1, 1]} : vector<16x8x128xf32> to vector<1x8x128xf32>
    %56 = vector.shape_cast %55 : vector<1x8x128xf32> to vector<8x128xf32>
    %57 = vector.extract_strided_slice %34 {offsets = [9, 0, 0], sizes = [1, 8, 128], strides = [1, 1, 1]} : vector<16x8x128xf32> to vector<1x8x128xf32>
    %58 = vector.shape_cast %57 : vector<1x8x128xf32> to vector<8x128xf32>
    %59 = arith.maximumf %56, %58 : vector<8x128xf32>
    %60 = vector.extract_strided_slice %34 {offsets = [10, 0, 0], sizes = [1, 8, 128], strides = [1, 1, 1]} : vector<16x8x128xf32> to vector<1x8x128xf32>
    %61 = vector.shape_cast %60 : vector<1x8x128xf32> to vector<8x128xf32>
    %62 = vector.extract_strided_slice %34 {offsets = [11, 0, 0], sizes = [1, 8, 128], strides = [1, 1, 1]} : vector<16x8x128xf32> to vector<1x8x128xf32>
    %63 = vector.shape_cast %62 : vector<1x8x128xf32> to vector<8x128xf32>
    %64 = arith.maximumf %61, %63 : vector<8x128xf32>
    %65 = vector.extract_strided_slice %34 {offsets = [12, 0, 0], sizes = [1, 8, 128], strides = [1, 1, 1]} : vector<16x8x128xf32> to vector<1x8x128xf32>
    %66 = vector.shape_cast %65 : vector<1x8x128xf32> to vector<8x128xf32>
    %67 = vector.extract_strided_slice %34 {offsets = [13, 0, 0], sizes = [1, 8, 128], strides = [1, 1, 1]} : vector<16x8x128xf32> to vector<1x8x128xf32>
    %68 = vector.shape_cast %67 : vector<1x8x128xf32> to vector<8x128xf32>
    %69 = arith.maximumf %66, %68 : vector<8x128xf32>
    %70 = vector.extract_strided_slice %34 {offsets = [14, 0, 0], sizes = [1, 8, 128], strides = [1, 1, 1]} : vector<16x8x128xf32> to vector<1x8x128xf32>
    %71 = vector.shape_cast %70 : vector<1x8x128xf32> to vector<8x128xf32>
    %72 = vector.extract_strided_slice %34 {offsets = [15, 0, 0], sizes = [1, 8, 128], strides = [1, 1, 1]} : vector<16x8x128xf32> to vector<1x8x128xf32>
    %73 = vector.shape_cast %72 : vector<1x8x128xf32> to vector<8x128xf32>
    %74 = arith.maximumf %71, %73 : vector<8x128xf32>
    %75 = vector.shape_cast %39 : vector<8x128xf32> to vector<1x8x128xf32>
    %76 = vector.shape_cast %44 : vector<8x128xf32> to vector<1x8x128xf32>
    %77 = vector.shape_cast %49 : vector<8x128xf32> to vector<1x8x128xf32>
    %78 = vector.shape_cast %54 : vector<8x128xf32> to vector<1x8x128xf32>
    %79 = vector.shape_cast %59 : vector<8x128xf32> to vector<1x8x128xf32>
    %80 = vector.shape_cast %64 : vector<8x128xf32> to vector<1x8x128xf32>
    %81 = vector.shape_cast %69 : vector<8x128xf32> to vector<1x8x128xf32>
    %82 = vector.shape_cast %74 : vector<8x128xf32> to vector<1x8x128xf32>
    %83 = tpu.concatenate %75, %76, %77, %78, %79, %80, %81, %82 in 0 : vector<1x8x128xf32>, vector<1x8x128xf32>, vector<1x8x128xf32>, vector<1x8x128xf32>, vector<1x8x128xf32>, vector<1x8x128xf32>, vector<1x8x128xf32>, vector<1x8x128xf32> -> vector<8x8x128xf32>
    %84 = vector.shape_cast %83 : vector<8x8x128xf32> to vector<64x128xf32>
    %c0_55 = arith.constant 0 : index
    %c0_56 = arith.constant 0 : index
    %85 = vector.load %arg8[%c0_55, %c0_56] : memref<64x128xf32, #tpu.memory_space<vmem>>, vector<64x128xf32>
    tpu.vector_store %arg8[%c0_55, %c0_56], %84 {strides = array<i32>} : memref<64x128xf32, #tpu.memory_space<vmem>>, vector<64x128xf32>,
    %c0_57 = arith.constant 0 : index
    %c0_58 = arith.constant 0 : index
    %86 = tpu.strided_load %arg8[%c0_57, %c0_58] {strides = array<i32: 2, 1>} : memref<64x128xf32, #tpu.memory_space<vmem>>, vector<32x128xf32>
    %c1_59 = arith.constant 1 : index
    %c0_60 = arith.constant 0 : index
    %87 = tpu.strided_load %arg8[%c1_59, %c0_60] {strides = array<i32: 2, 1>} : memref<64x128xf32, #tpu.memory_space<vmem>>, vector<32x128xf32>
    %88 = arith.maximumf %86, %87 : vector<32x128xf32>
    %c0_61 = arith.constant 0 : index
    %c0_62 = arith.constant 0 : index
    %89 = vector.load %arg6[%c0_61, %c0_62] : memref<32x128xf32, #tpu.memory_space<vmem>>, vector<32x128xf32>
    tpu.vector_store %arg6[%c0_61, %c0_62], %88 {strides = array<i32>} : memref<32x128xf32, #tpu.memory_space<vmem>>, vector<32x128xf32>,
    return
  }
  func.func @transform_0(%arg0: i32) -> (i32, i32, i32, i32) {
    %c0_i32 = arith.constant 0 : i32
    %c0_i32_0 = arith.constant 0 : i32
    %c0_i32_1 = arith.constant 0 : i32
    %c0_i32_2 = arith.constant 0 : i32
    %c0_i32_3 = arith.constant 0 : i32
    return %c0_i32, %c0_i32_0, %c0_i32_1, %c0_i32_2 : i32, i32, i32, i32
  }
  func.func @transform_1(%arg0: i32) -> (i32, i32) {
    %c0_i32 = arith.constant 0 : i32
    %c0_i32_0 = arith.constant 0 : i32
    %c0_i32_1 = arith.constant 0 : i32
    return %c0_i32, %c0_i32_0 : i32, i32
  }
  func.func @transform_2(%arg0: i32) -> (i32, i32) {
    %c0_i32 = arith.constant 0 : i32
    %c0_i32_0 = arith.constant 0 : i32
    %c0_i32_1 = arith.constant 0 : i32
    return %c0_i32, %c0_i32_0 : i32, i32
  }
  func.func @transform_3(%arg0: i32) -> (i32, i32) {
    %c0_i32 = arith.constant 0 : i32
    %c0_i32_0 = arith.constant 0 : i32
    %c0_i32_1 = arith.constant 0 : i32
    return %c0_i32, %c0_i32_0 : i32, i32
  }
  func.func @transform_4(%arg0: i32) -> (i32, i32) {
    %c0_i32 = arith.constant 0 : i32
    %c0_i32_0 = arith.constant 0 : i32
    %c0_i32_1 = arith.constant 0 : i32
    return %c0_i32, %c0_i32_0 : i32, i32
  }
  func.func @transform_5(%arg0: i32) -> (i32, i32) {
    %c0_i32 = arith.constant 0 : i32
    %c0_i32_0 = arith.constant 0 : i32
    %c0_i32_1 = arith.constant 0 : i32
    return %c0_i32, %c0_i32_0 : i32, i32
  }
}

</mosaic_0001>

<bundles_post_ra>
// kernel: tpu_custom_call.1
= control target key start
LH: loop header
LB: loop body
LE: loop exit
PB: predicated region body
PF: predicated region fallthrough
CT: control target
= control target key end

     0   :  { %10 = vsyncpa [#allocation5], 0  ;;  %s1847_s0 = inlined_call_operand.hbm [shape: f32[2,8,8,64], index: 0, kind: input, shape index: {}]   ;;  %s1848_s1 = inlined_call_operand.hbm [shape: f32[512,128], index: 1, kind: input, shape index: {}]   ;;  %s1849_s2 = inlined_call_operand.vmem [shape: f32[1,128], index: 2, kind: input, shape index: {}]   ;;  %s1850_s3 = inlined_call_operand.hbm [shape: f32[512,128], index: 3, kind: input, shape index: {}]   ;;  %s1851_s4 = inlined_call_operand.vmem [shape: f32[1,128], index: 4, kind: input, shape index: {}]   ;;  %s1852_s5 = inlined_call_operand.hbm [shape: f32[32,128], index: 5, kind: output, shape index: {}]  }
   0x1   :  { %11 = vsyncpa [#allocation8], 0 }
   0x2   :  { %12 = vsyncpa [#allocation6], 0  ;;  %s1612_s18 = smov [#allocation7]   ;;  %s1613_s20 = smov [#allocation4]  }
   0x3   :  { %s30_s19 = sshll.u32 %s1612_s18, 4  ;;  %s18_s21 = sshll.u32 %s1613_s20, 4  ;;  %s31_s19 = int_to_ptr.vmem [resolvable:$true] %s30_s19  ;;  %s1649_s21 = int_to_ptr.vmem [resolvable:$true] %s18_s21 }
   0x4   :  { %s1518_s24 = scalar_lea.hbm %s1848_s1, 8192 }
   0x5   :  { %p1519_p0 = scmp.ne.s32.totalorder %s1848_s1, %s1518_s24  ;;  %p1522_p1 = scmp.lt.u32.totalorder %s1518_s24, %s1848_s1 }
   0x7   :  { %p1524_p2 = pnand %p1522_p1, %p1519_p0 }
   0x9   :  { %1527 = shalt.err (!%p1524_p2)
}
   0xa   :  { %s1528_s29 = scalar_lea.vmem %s31_s19, 8192  ;;  %p1533_p4 = scmp.lt.s32.totalorder %s31_s19, %s31_s19 }
   0xb   :  { %p1529_p3 = scmp.ne.s32.totalorder %s31_s19, %s1528_s29  ;;  %p1534_p5 = scmp.lt.s32.totalorder %s1528_s29, %s1528_s29 }
   0xd   :  { %p1535_p6 = por %p1534_p5, %p1533_p4 }
   0xf   :  { %p1536_p7 = pnand %p1535_p6, %p1529_p3 }
  0x11   :  { %1539 = shalt.err (!%p1536_p7)
}
  0x12   :  { %s1614_s30 = smov 128   ;;  %s1615_s6 = smov 8  }
  0x13   :  { %36 = dma.hbm_to_vmem [thread:$0]  %s1848_s1, 8192, %s31_s19, [#allocation8], %s1614_s30, %s1614_s30, %s1615_s6  }
  0x14   :  { %s1540_s11 = scalar_lea.hbm %s1847_s0, 2048 }
  0x15   :  { %p1541_p8 = scmp.ne.s32.totalorder %s1847_s0, %s1540_s11  ;;  %p1544_p9 = scmp.lt.u32.totalorder %s1540_s11, %s1847_s0 }
  0x17   :  { %p1546_p10 = pnand %p1544_p9, %p1541_p8 }
  0x19   :  { %1549 = shalt.err (!%p1546_p10)
}
  0x1a   :  { %s1550_s16 = scalar_lea.vmem %s1649_s21, 2048  ;;  %p1555_p12 = scmp.lt.s32.totalorder %s1649_s21, %s1649_s21 }
  0x1b   :  { %p1551_p11 = scmp.ne.s32.totalorder %s1649_s21, %s1550_s16  ;;  %p1556_p13 = scmp.lt.s32.totalorder %s1550_s16, %s1550_s16 }
  0x1d   :  { %p1557_p0 = por %p1556_p13, %p1555_p12 }
  0x1f   :  { %p1558_p1 = pnand %p1557_p0, %p1551_p11 }
  0x21   :  { %1561 = shalt.err (!%p1558_p1)
}
  0x22   :  { %24 = dma.hbm_to_vmem [thread:$0]  %s1847_s0, 2048, %s1649_s21, [#allocation5], %s1614_s30, %s1614_s30, %s1615_s6  }
  0x23   :  { %s1616_s18 = smov [#allocation9]   ;;  %s1562_s23 = scalar_lea.hbm %s1850_s3, 8192 }
  0x24   :  { %s44_s19 = sshll.u32 %s1616_s18, 4  ;;  %p1563_p2 = scmp.ne.s32.totalorder %s1850_s3, %s1562_s23  ;;  %s45_s19 = int_to_ptr.vmem [resolvable:$true] %s44_s19 }
  0x25   :  { %p1566_p3 = scmp.lt.u32.totalorder %s1562_s23, %s1850_s3 }
  0x27   :  { %p1568_p4 = pnand %p1566_p3, %p1563_p2 }
  0x29   :  { %1571 = shalt.err (!%p1568_p4)
}
  0x2a   :  { %s1572_s28 = scalar_lea.vmem %s45_s19, 8192  ;;  %p1577_p6 = scmp.lt.s32.totalorder %s45_s19, %s45_s19 }
  0x2b   :  { %p1573_p5 = scmp.ne.s32.totalorder %s45_s19, %s1572_s28  ;;  %p1578_p7 = scmp.lt.s32.totalorder %s1572_s28, %s1572_s28 }
  0x2d   :  { %p1579_p8 = por %p1578_p7, %p1577_p6 }
  0x2f   :  { %p1580_p9 = pnand %p1579_p8, %p1573_p5 }
  0x31   :  { %1583 = shalt.err (!%p1580_p9)
}
  0x32   :  { %50 = dma.hbm_to_vmem [thread:$0]  %s1850_s3, 8192, %s45_s19, [#allocation8], %s1614_s30, %s1614_s30, %s1615_s6  }
  0x33   :  { %1606 = dma.done.wait [#allocation5], 2048  }
  0x34   :  { %1607 = vsyncadd [#allocation5], 4294965248 }
  0x35   :  { %1608 = dma.done.wait [#allocation8], 16384  }
  0x36   :  { %1609 = vsyncadd [#allocation8], 4294950912  ;;  %v1617_v0 = vmov 0.0   ;;  %v217_v1 = vld [vmem:[#allocation7 + $0x80] sm:$0xff]  ;;  %v218_v2 = vld [vmem:[#allocation7 + $0x88] sm:$0xff]  ;;  %vm119_vm0 = vcmask 523264  }
  0x37   :  { %62 = vst [vmem:[#allocation2] sm:$0xff] %v1617_v0  ;;  %63 = vst [vmem:[#allocation2 + $0x8] sm:$0x3] %v1617_v0  ;;  %v201_v3 = vld [vmem:[#allocation7] sm:$0xff]  ;;  %v1382_v4 = vpack.c.bf16 %v218_v2, %v217_v1  ;;  %v202_v5 = vld [vmem:[#allocation7 + $0x8] sm:$0xff] }
  0x38   :  { %64 = vst [vmem:[#allocation2 + $0x10] sm:$0xff] %v1617_v0  ;;  %65 = vst [vmem:[#allocation2 + $0x18] sm:$0x3] %v1617_v0  ;;  %v249_v6 = vld [vmem:[#allocation7 + $0x180] sm:$0xff]  ;;  %v250_v7 = vld [vmem:[#allocation7 + $0x188] sm:$0xff]  ;;  %v1384_v8 = vpack.c.bf16 %v202_v5, %v201_v3 }
  0x39   :  { %66 = vst [vmem:[#allocation2 + $0x20] sm:$0xff] %v1617_v0  ;;  %67 = vst [vmem:[#allocation2 + $0x28] sm:$0x3] %v1617_v0  ;;  %v1414_v9 = vpack.c.bf16 %v250_v7, %v249_v6  ;;  %v233_v10 = vld [vmem:[#allocation7 + $0x100] sm:$0xff]  ;;  %v234_v11 = vld [vmem:[#allocation7 + $0x108] sm:$0xff]  ;;  %1383 = vmatprep.subr.bf16.mxu0 %v1382_v4 }
  0x3a   :  { %68 = vst [vmem:[#allocation2 + $0x30] sm:$0xff] %v1617_v0  ;;  %69 = vst [vmem:[#allocation2 + $0x38] sm:$0x3] %v1617_v0  ;;  %v219_v12 = vld [vmem:[#allocation7 + $0x90] sm:$0xff]  ;;  %v1416_v13 = vpack.c.bf16 %v234_v11, %v233_v10  ;;  %v220_v14 = vld [vmem:[#allocation7 + $0x98] sm:$0xff]  ;;  %1385 = vmatpush3.bf16.msra.mxu0 %v1384_v8 }
  0x3b   :  { %70 = vst [vmem:[#allocation2 + $0x40] sm:$0xff] %v1617_v0  ;;  %71 = vst [vmem:[#allocation2 + $0x48] sm:$0x3] %v1617_v0  ;;  %v203_v15 = vld [vmem:[#allocation7 + $0x10] sm:$0xff]  ;;  %v204_v16 = vld [vmem:[#allocation7 + $0x18] sm:$0xff]  ;;  %1415 = vmatprep.subr.bf16.mxu1 %v1414_v9  ;;  %v1386_v17 = vpack.c.bf16 %v220_v14, %v219_v12 }
  0x3c   :  { %72 = vst [vmem:[#allocation2 + $0x50] sm:$0xff] %v1617_v0  ;;  %73 = vst [vmem:[#allocation2 + $0x58] sm:$0x3] %v1617_v0  ;;  %v1388_v18 = vpack.c.bf16 %v204_v16, %v203_v15  ;;  %v251_v19 = vld [vmem:[#allocation7 + $0x190] sm:$0xff]  ;;  %v252_v20 = vld [vmem:[#allocation7 + $0x198] sm:$0xff]  ;;  %1417 = vmatpush3.bf16.msra.mxu1 %v1416_v13 }
  0x3d   :  { %74 = vst [vmem:[#allocation2 + $0x60] sm:$0xff] %v1617_v0  ;;  %75 = vst [vmem:[#allocation2 + $0x68] sm:$0x3] %v1617_v0  ;;  %v235_v21 = vld [vmem:[#allocation7 + $0x110] sm:$0xff]  ;;  %v1418_v22 = vpack.c.bf16 %v252_v20, %v251_v19  ;;  %v236_v23 = vld [vmem:[#allocation7 + $0x118] sm:$0xff]  ;;  %1387 = vmatprep.subr.bf16.mxu0 %v1386_v17 }
  0x3e   :  { %76 = vst [vmem:[#allocation2 + $0x70] sm:$0xff] %v1617_v0  ;;  %77 = vst [vmem:[#allocation2 + $0x78] sm:$0x3] %v1617_v0  ;;  %v221_v24 = vld [vmem:[#allocation7 + $0xa0] sm:$0xff]  ;;  %v222_v25 = vld [vmem:[#allocation7 + $0xa8] sm:$0xff]  ;;  %v1420_v26 = vpack.c.bf16 %v236_v23, %v235_v21  ;;  %1389 = vmatpush3.bf16.msra.mxu0 %v1388_v18 }
  0x3f   :  { %78 = vst [vmem:[#allocation2 + $0x80] sm:$0xff] %v1617_v0  ;;  %79 = vst [vmem:[#allocation2 + $0x88] sm:$0x3] %v1617_v0  ;;  %v1390_v27 = vpack.c.bf16 %v222_v25, %v221_v24  ;;  %v205_v28 = vld [vmem:[#allocation7 + $0x20] sm:$0xff]  ;;  %v206_v29 = vld [vmem:[#allocation7 + $0x28] sm:$0xff]  ;;  %1419 = vmatprep.subr.bf16.mxu1 %v1418_v22 }
  0x40   :  { %80 = vst [vmem:[#allocation2 + $0x90] sm:$0xff] %v1617_v0  ;;  %81 = vst [vmem:[#allocation2 + $0x98] sm:$0x3] %v1617_v0  ;;  %v253_v30 = vld [vmem:[#allocation7 + $0x1a0] sm:$0xff]  ;;  %v254_v31 = vld [vmem:[#allocation7 + $0x1a8] sm:$0xff]  ;;  %v1392_v34 = vpack.c.bf16 %v206_v29, %v205_v28  ;;  %1421 = vmatpush3.bf16.msra.mxu1 %v1420_v26 }
  0x41   :  { %82 = vst [vmem:[#allocation2 + $0xa0] sm:$0xff] %v1617_v0  ;;  %83 = vst [vmem:[#allocation2 + $0xa8] sm:$0x3] %v1617_v0  ;;  %v237_v32 = vld [vmem:[#allocation7 + $0x120] sm:$0xff]  ;;  %v238_v33 = vld [vmem:[#allocation7 + $0x128] sm:$0xff]  ;;  %v1422_v35 = vpack.c.bf16 %v254_v31, %v253_v30  ;;  %1391 = vmatprep.subr.bf16.mxu0 %v1390_v27 }
  0x42   :  { %84 = vst [vmem:[#allocation2 + $0xb0] sm:$0xff] %v1617_v0  ;;  %85 = vst [vmem:[#allocation2 + $0xb8] sm:$0x3] %v1617_v0  ;;  %v223_v36 = vld [vmem:[#allocation7 + $0xb0] sm:$0xff]  ;;  %v224_v37 = vld [vmem:[#allocation7 + $0xb8] sm:$0xff]  ;;  %v1424_v39 = vpack.c.bf16 %v238_v33, %v237_v32  ;;  %1393 = vmatpush3.bf16.msra.mxu0 %v1392_v34 }
  0x43   :  { %86 = vst [vmem:[#allocation2 + $0xc0] sm:$0xff] %v1617_v0  ;;  %87 = vst [vmem:[#allocation2 + $0xc8] sm:$0x3] %v1617_v0  ;;  %v207_v38 = vld [vmem:[#allocation7 + $0x30] sm:$0xff]  ;;  %v1394_v40 = vpack.c.bf16 %v224_v37, %v223_v36  ;;  %v208_v41 = vld [vmem:[#allocation7 + $0x38] sm:$0xff]  ;;  %1423 = vmatprep.subr.bf16.mxu1 %v1422_v35 }
  0x44   :  { %88 = vst [vmem:[#allocation2 + $0xd0] sm:$0xff] %v1617_v0  ;;  %89 = vst [vmem:[#allocation2 + $0xd8] sm:$0x3] %v1617_v0  ;;  %v255_v42 = vld [vmem:[#allocation7 + $0x1b0] sm:$0xff]  ;;  %v256_v43 = vld [vmem:[#allocation7 + $0x1b8] sm:$0xff]  ;;  %v1396_v49 = vpack.c.bf16 %v208_v41, %v207_v38  ;;  %1425 = vmatpush3.bf16.msra.mxu1 %v1424_v39 }
  0x45   :  { %90 = vst [vmem:[#allocation2 + $0xe0] sm:$0xff] %v1617_v0  ;;  %91 = vst [vmem:[#allocation2 + $0xe8] sm:$0x3] %v1617_v0  ;;  %v1426_v44 = vpack.c.bf16 %v256_v43, %v255_v42  ;;  %v239_v45 = vld [vmem:[#allocation7 + $0x130] sm:$0xff]  ;;  %v240_v46 = vld [vmem:[#allocation7 + $0x138] sm:$0xff]  ;;  %1395 = vmatprep.subr.bf16.mxu0 %v1394_v40 }
  0x46   :  { %92 = vst [vmem:[#allocation2 + $0xf0] sm:$0xff] %v1617_v0  ;;  %93 = vst [vmem:[#allocation2 + $0xf8] sm:$0x3] %v1617_v0  ;;  %v225_v47 = vld [vmem:[#allocation7 + $0xc0] sm:$0xff]  ;;  %v226_v48 = vld [vmem:[#allocation7 + $0xc8] sm:$0xff]  ;;  %v1428_v52 = vpack.c.bf16 %v240_v46, %v239_v45  ;;  %1397 = vmatpush3.bf16.msra.mxu0 %v1396_v49 }
  0x47   :  { %94 = vst [vmem:[#allocation2 + $0x100] sm:$0xff] %v1617_v0  ;;  %95 = vst [vmem:[#allocation2 + $0x108] sm:$0x3] %v1617_v0  ;;  %v257_v50 = vld [vmem:[#allocation7 + $0x1c0] sm:$0xff]  ;;  %v258_v51 = vld [vmem:[#allocation7 + $0x1c8] sm:$0xff]  ;;  %v1398_v53 = vpack.c.bf16 %v226_v48, %v225_v47  ;;  %1427 = vmatprep.subr.bf16.mxu1 %v1426_v44 }
  0x48   :  { %96 = vst [vmem:[#allocation2 + $0x110] sm:$0xff] %v1617_v0  ;;  %97 = vst [vmem:[#allocation2 + $0x118] sm:$0x3] %v1617_v0  ;;  %v209_v54 = vld [vmem:[#allocation7 + $0x40] sm:$0xff]  ;;  %v210_v55 = vld [vmem:[#allocation7 + $0x48] sm:$0xff]  ;;  %v1430_v57 = vpack.c.bf16 %v258_v51, %v257_v50  ;;  %1429 = vmatpush3.bf16.msra.mxu1 %v1428_v52 }
  0x49   :  { %98 = vst [vmem:[#allocation2 + $0x120] sm:$0xff] %v1617_v0  ;;  %99 = vst [vmem:[#allocation2 + $0x128] sm:$0x3] %v1617_v0  ;;  %v241_v56 = vld [vmem:[#allocation7 + $0x140] sm:$0xff]  ;;  %v242_v58 = vld [vmem:[#allocation7 + $0x148] sm:$0xff]  ;;  %v1400_v63 = vpack.c.bf16 %v210_v55, %v209_v54  ;;  %1399 = vmatprep.subr.bf16.mxu0 %v1398_v53 }
  0x4a   :  { %100 = vst [vmem:[#allocation2 + $0x130] sm:$0xff] %v1617_v0  ;;  %101 = vst [vmem:[#allocation2 + $0x138] sm:$0x3] %v1617_v0  ;;  %v227_v59 = vld [vmem:[#allocation7 + $0xd0] sm:$0xff]  ;;  %v228_v60 = vld [vmem:[#allocation7 + $0xd8] sm:$0xff]  ;;  %v1432_v1 = vpack.c.bf16 %v242_v58, %v241_v56  ;;  %1431 = vmatprep.subr.bf16.mxu1 %v1430_v57 }
  0x4b   :  { %v259_v61 = vld [vmem:[#allocation7 + $0x1d0] sm:$0xff]  ;;  %v260_v62 = vld [vmem:[#allocation7 + $0x1d8] sm:$0xff]  ;;  %v1402_v2 = vpack.c.bf16 %v228_v60, %v227_v59  ;;  %v229_v8 = vld [vmem:[#allocation7 + $0xe0] sm:$0xff]  ;;  %1401 = vmatpush3.bf16.msra.mxu0 %v1400_v63 }
  0x4c   :  { %v211_v3 = vld [vmem:[#allocation7 + $0x50] sm:$0xff]  ;;  %v212_v4 = vld [vmem:[#allocation7 + $0x58] sm:$0xff]  ;;  %v1434_v6 = vpack.c.bf16 %v260_v62, %v259_v61  ;;  %v230_v9 = vld [vmem:[#allocation7 + $0xe8] sm:$0xff]  ;;  %1433 = vmatpush3.bf16.msra.mxu1 %v1432_v1 }
  0x4d   :  { %v243_v5 = vld [vmem:[#allocation7 + $0x150] sm:$0xff]  ;;  %v244_v7 = vld [vmem:[#allocation7 + $0x158] sm:$0xff]  ;;  %v1741_v10 = vld [vmem:[#allocation7 + $0x60] sm:$0xff]  ;;  %v1404_v14 = vpack.c.bf16 %v212_v4, %v211_v3  ;;  %1403 = vmatprep.subr.bf16.mxu0 %v1402_v2  ;;  %v1406_v20 = vpack.c.bf16 %v230_v9, %v229_v8 }
  0x4e   :  { %v214_v11 = vld [vmem:[#allocation7 + $0x68] sm:$0xff]  ;;  %v261_v12 = vld [vmem:[#allocation7 + $0x1e0] sm:$0xff]  ;;  %v231_v17 = vld [vmem:[#allocation7 + $0xf0] sm:$0xff]  ;;  %v1436_v19 = vpack.c.bf16 %v244_v7, %v243_v5  ;;  %1435 = vmatprep.subr.bf16.mxu1 %v1434_v6 }
  0x4f   :  { %v262_v13 = vld [vmem:[#allocation7 + $0x1e8] sm:$0xff]  ;;  %v245_v15 = vld [vmem:[#allocation7 + $0x160] sm:$0xff]  ;;  %v232_v18 = vld [vmem:[#allocation7 + $0xf8] sm:$0xff]  ;;  %1405 = vmatpush3.bf16.msra.mxu0 %v1404_v14  ;;  %v1408_v34 = vpack.c.bf16 %v214_v11, %v1741_v10 }
  0x50   :  { %v246_v16 = vld [vmem:[#allocation7 + $0x168] sm:$0xff]  ;;  %v263_v21 = vld [vmem:[#allocation7 + $0x1f0] sm:$0xff]  ;;  %v264_v22 = vld [vmem:[#allocation7 + $0x1f8] sm:$0xff]  ;;  %v1438_v25 = vpack.c.bf16 %v262_v13, %v261_v12  ;;  %1437 = vmatpush3.bf16.msra.mxu1 %v1436_v19  ;;  %1407 = vmatprep.subr.bf16.mxu0 %v1406_v20  ;;  %v1410_v39 = vpack.c.bf16 %v232_v18, %v231_v17 }
  0x51   :  { %v1743_v23 = vld [vmem:[#allocation2 + $0x2] sm:$0xff]  ;;  %v104_v27 = vld [vmem:[#allocation4 + $0x10] sm:$0xff]  ;;  %v105_v28 = vld [vmem:[#allocation4 + $0x18] sm:$0xff]  ;;  %v1440_v38 = vpack.c.bf16 %v246_v16, %v245_v15  ;;  %v1442_v43 = vpack.c.bf16 %v264_v22, %v263_v21 }
  0x52   :  { %v103_v24 = vld [vmem:[#allocation4 + $0x8] sm:$0xff]  ;;  %336 = vmatprep.mubr.f32.mxu0 %v1743_v23  ;;  %v102_v26 = vld [vmem:[#allocation4] sm:$0xff]  ;;  %v215_v29 = vld [vmem:[#allocation7 + $0x70] sm:$0xff]  ;;  %122 = vst.msk [vmem:[#allocation2 + $0x31] sm:$0xff] %vm119_vm0, %v104_v27  ;;  %1439 = vmatprep.subr.bf16.mxu1 %v1438_v25 }
  0x53   :  { %121 = vst.msk [vmem:[#allocation2 + $0x21] sm:$0xff] %vm119_vm0, %v103_v24  ;;  %v216_v30 = vld [vmem:[#allocation7 + $0x78] sm:$0xff]  ;;  %120 = vst.msk [vmem:[#allocation2 + $0x11] sm:$0xff] %vm119_vm0, %v102_v26  ;;  %v106_v31 = vld [vmem:[#allocation4 + $0x20] sm:$0xff]  ;;  %1409 = vmatpush3.bf16.msra.mxu0 %v1408_v34 }
  0x54   :  { %123 = vst.msk [vmem:[#allocation2 + $0x41] sm:$0xff] %vm119_vm0, %v105_v28  ;;  %v107_v32 = vld [vmem:[#allocation4 + $0x28] sm:$0xff]  ;;  %v108_v33 = vld [vmem:[#allocation4 + $0x30] sm:$0xff]  ;;  %v248_v36 = vld [vmem:[#allocation7 + $0x178] sm:$0xff]  ;;  %v1412_v49 = vpack.c.bf16 %v216_v30, %v215_v29  ;;  %1441 = vmatpush3.bf16.msra.mxu1 %v1440_v38  ;;  %1411 = vmatprep.subr.bf16.mxu0 %v1410_v39 }
  0x55   :  { %v247_v35 = vld [vmem:[#allocation7 + $0x170] sm:$0xff]  ;;  %124 = vst.msk [vmem:[#allocation2 + $0x51] sm:$0xff] %vm119_vm0, %v106_v31  ;;  %125 = vst.msk [vmem:[#allocation2 + $0x61] sm:$0xff] %vm119_vm0, %v107_v32  ;;  %v109_v37 = vld [vmem:[#allocation4 + $0x38] sm:$0xff]  ;;  %1443 = vmatprep.subr.bf16.mxu1 %v1442_v43 }
  0x56   :  { %126 = vst.msk [vmem:[#allocation2 + $0x71] sm:$0xff] %vm119_vm0, %v108_v33  ;;  %127 = vst.msk [vmem:[#allocation2 + $0x81] sm:$0xff] %vm119_vm0, %v109_v37  ;;  %v111_v40 = vld [vmem:[#allocation4 + $0x48] sm:$0xff]  ;;  %v110_v41 = vld [vmem:[#allocation4 + $0x40] sm:$0xff]  ;;  %v1444_v52 = vpack.c.bf16 %v248_v36, %v247_v35 }
  0x57   :  { %v112_v42 = vld [vmem:[#allocation4 + $0x50] sm:$0xff]  ;;  %129 = vst.msk [vmem:[#allocation2 + $0xc1] sm:$0xff] %vm119_vm0, %v111_v40  ;;  %128 = vst.msk [vmem:[#allocation2 + $0xb1] sm:$0xff] %vm119_vm0, %v110_v41  ;;  %v113_v44 = vld [vmem:[#allocation4 + $0x58] sm:$0xff]  ;;  %1413 = vmatpush3.bf16.msra.mxu0 %v1412_v49 }
  0x58   :  { %130 = vst.msk [vmem:[#allocation2 + $0xd1] sm:$0xff] %vm119_vm0, %v112_v42  ;;  %v114_v45 = vld [vmem:[#allocation4 + $0x60] sm:$0xff]  ;;  %v115_v46 = vld [vmem:[#allocation4 + $0x68] sm:$0xff]  ;;  %131 = vst.msk [vmem:[#allocation2 + $0xe1] sm:$0xff] %vm119_vm0, %v113_v44  ;;  %1445 = vmatpush3.bf16.msra.mxu1 %v1444_v52 }
  0x59   :  { %132 = vst.msk [vmem:[#allocation2 + $0xf1] sm:$0xff] %vm119_vm0, %v114_v45  ;;  %133 = vst.msk [vmem:[#allocation2 + $0x101] sm:$0xff] %vm119_vm0, %v115_v46  ;;  %v116_v47 = vld [vmem:[#allocation4 + $0x70] sm:$0xff]  ;;  %v117_v48 = vld [vmem:[#allocation4 + $0x78] sm:$0xff] }
  0x5a   :  { %134 = vst.msk [vmem:[#allocation2 + $0x111] sm:$0xff] %vm119_vm0, %v116_v47  ;;  %135 = vst.msk [vmem:[#allocation2 + $0x121] sm:$0xff] %vm119_vm0, %v117_v48  ;;  %v658_v50 = vld [vmem:[#allocation9 + $0x80] sm:$0xff]  ;;  %v659_v51 = vld [vmem:[#allocation9 + $0x88] sm:$0xff]  ;;  %337 = vmatmul.mubr.f32.vlgmr.msra.gmra.mrb[0].mxu0 %v1617_v0 }
  0x5b   :  { %v185_v53 = vld [vmem:[#allocation2 + $0x22] sm:$0xff]  ;;  %v1446_v54 = vpack.c.bf16 %v659_v51, %v658_v50  ;;  %v153_v58 = vld [vmem:[#allocation2 + $0x12] sm:$0xff] }
  0x5c   :  { %481 = vmatprep.mubr.f32.mxu1 %v185_v53  ;;  %v642_v55 = vld [vmem:[#allocation9] sm:$0xff]  ;;  %v643_v56 = vld [vmem:[#allocation9 + $0x8] sm:$0xff]  ;;  %v186_v60 = vld [vmem:[#allocation2 + $0x32] sm:$0xff]  ;;  %341 = vmatprep.mubr.f32.mxu0 %v153_v58 }
  0x5d   :  { %v169_v57 = vld [vmem:[#allocation2 + $0x20] sm:$0xff]  ;;  %1447 = vmatprep.subr.bf16.mxu0 %v1446_v54  ;;  %v1448_v59 = vpack.c.bf16 %v643_v56, %v642_v55  ;;  %v137_v61 = vld [vmem:[#allocation2 + $0x10] sm:$0xff]  ;;  %v691_v4 = vld [vmem:[#allocation9 + $0x188] sm:$0xff] }
  0x5e   :  { %482 = vmatmul.mubr.f32.vlgmr.msra.gmra.mrb[0].mxu1 %v169_v57  ;;  %v170_v62 = vld [vmem:[#allocation2 + $0x30] sm:$0xff]  ;;  %v187_v63 = vld [vmem:[#allocation2 + $0x42] sm:$0xff]  ;;  %342 = vmatmul.mubr.f32.gmra.mrb[2].mxu0 %v137_v61  ;;  %v661_v9 = vld [vmem:[#allocation9 + $0x98] sm:$0xff] }
  0x5f   :  { %486 = vmatprep.mubr.f32.mxu1 %v186_v60  ;;  %1449 = vmatpush3.bf16.msra.mxu0 %v1448_v59  ;;  %v171_v1 = vld [vmem:[#allocation2 + $0x40] sm:$0xff]  ;;  %v1764_v2 = vld [vmem:[#allocation2 + $0x52] sm:$0xff]  ;;  %v675_v7 = vld [vmem:[#allocation9 + $0x108] sm:$0xff] }
  0x60   :  { %346 = vmatprep.mubr.f32.mxu0 %v185_v53  ;;  %v690_v3 = vld [vmem:[#allocation9 + $0x180] sm:$0xff]  ;;  %v660_v8 = vld [vmem:[#allocation9 + $0x90] sm:$0xff]  ;;  %v645_v13 = vld [vmem:[#allocation9 + $0x18] sm:$0xff] }
  0x61   :  { %v674_v5 = vld [vmem:[#allocation9 + $0x100] sm:$0xff]  ;;  %v1478_v6 = vpack.c.bf16 %v691_v4, %v690_v3  ;;  %v1450_v11 = vpack.c.bf16 %v661_v9, %v660_v8  ;;  %v644_v12 = vld [vmem:[#allocation9 + $0x10] sm:$0xff]  ;;  %v693_v15 = vld [vmem:[#allocation9 + $0x198] sm:$0xff] }
  0x62   :  { %487 = vmatmul.mubr.f32.gmra.mrb[2].mxu1 %v170_v62  ;;  %v1480_v10 = vpack.c.bf16 %v675_v7, %v674_v5  ;;  %v692_v14 = vld [vmem:[#allocation9 + $0x190] sm:$0xff]  ;;  %347 = vmatmul.mubr.f32.gmra.mrb[4].mxu0 %v169_v57  ;;  %v677_v17 = vld [vmem:[#allocation9 + $0x118] sm:$0xff]  ;;  %v662_v20 = vld [vmem:[#allocation9 + $0xa0] sm:$0xff]  ;;  %v1452_v24 = vpack.c.bf16 %v645_v13, %v644_v12 }
  0x63   :  { %491 = vmatprep.mubr.f32.mxu1 %v187_v63  ;;  %1479 = vmatprep.subr.bf16.mxu1 %v1478_v6  ;;  %v676_v16 = vld [vmem:[#allocation9 + $0x110] sm:$0xff]  ;;  %v1482_v19 = vpack.c.bf16 %v693_v15, %v692_v14  ;;  %v663_v21 = vld [vmem:[#allocation9 + $0xa8] sm:$0xff]  ;;  %v694_v25 = vld [vmem:[#allocation9 + $0x1a0] sm:$0xff] }
  0x64   :  { %351 = vmatprep.mubr.f32.mxu0 %v186_v60  ;;  %v172_v18 = vld [vmem:[#allocation2 + $0x50] sm:$0xff]  ;;  %v189_v22 = vld [vmem:[#allocation2 + $0x62] sm:$0xff]  ;;  %1481 = vmatpush3.bf16.msra.mxu1 %v1480_v10  ;;  %v1484_v27 = vpack.c.bf16 %v677_v17, %v676_v16  ;;  %v1454_v28 = vpack.c.bf16 %v663_v21, %v662_v20  ;;  %v665_v35 = vld [vmem:[#allocation9 + $0xb8] sm:$0xff] }
  0x65   :  { %v695_v26 = vld [vmem:[#allocation9 + $0x1a8] sm:$0xff]  ;;  %1451 = vmatprep.subr.bf16.mxu0 %v1450_v11  ;;  %1483 = vmatprep.subr.bf16.mxu1 %v1482_v19  ;;  %v646_v29 = vld [vmem:[#allocation9 + $0x20] sm:$0xff]  ;;  %v664_v34 = vld [vmem:[#allocation9 + $0xb0] sm:$0xff] }
  0x66   :  { %492 = vmatmul.mubr.f32.gmra.mrb[4].mxu1 %v171_v1  ;;  %v647_v30 = vld [vmem:[#allocation9 + $0x28] sm:$0xff]  ;;  %v678_v31 = vld [vmem:[#allocation9 + $0x120] sm:$0xff]  ;;  %352 = vmatmul.mubr.f32.gmra.mrb[6].mxu0 %v170_v62  ;;  %v1486_v32 = vpack.c.bf16 %v695_v26, %v694_v25  ;;  %v696_v36 = vld [vmem:[#allocation9 + $0x1b0] sm:$0xff]  ;;  %v1458_v42 = vpack.c.bf16 %v665_v35, %v664_v34 }
  0x67   :  { %496 = vmatprep.mubr.f32.mxu1 %v1764_v2  ;;  %v679_v33 = vld [vmem:[#allocation9 + $0x128] sm:$0xff]  ;;  %356 = vmatprep.mubr.f32.mxu0 %v187_v63  ;;  %v697_v37 = vld [vmem:[#allocation9 + $0x1b8] sm:$0xff]  ;;  %v173_v38 = vld [vmem:[#allocation2 + $0x60] sm:$0xff]  ;;  %v1456_v40 = vpack.c.bf16 %v647_v30, %v646_v29 }
  0x68   :  { %v190_v39 = vld [vmem:[#allocation2 + $0x72] sm:$0xff]  ;;  %1453 = vmatpush3.bf16.msra.mxu0 %v1452_v24  ;;  %1485 = vmatpush3.bf16.msra.mxu1 %v1484_v27  ;;  %v1488_v41 = vpack.c.bf16 %v679_v33, %v678_v31  ;;  %v1490_v46 = vpack.c.bf16 %v697_v37, %v696_v36  ;;  %v666_v48 = vld [vmem:[#allocation9 + $0xc0] sm:$0xff]  ;;  %v667_v49 = vld [vmem:[#allocation9 + $0xc8] sm:$0xff] }
  0x69   :  { %1455 = vmatprep.subr.bf16.mxu0 %v1454_v28  ;;  %v648_v43 = vld [vmem:[#allocation9 + $0x30] sm:$0xff]  ;;  %v649_v44 = vld [vmem:[#allocation9 + $0x38] sm:$0xff]  ;;  %1487 = vmatprep.subr.bf16.mxu1 %v1486_v32  ;;  %v698_v50 = vld [vmem:[#allocation9 + $0x1c0] sm:$0xff]  ;;  %v1462_v56 = vpack.c.bf16 %v667_v49, %v666_v48 }
  0x6a   :  { %497 = vmatmul.mubr.f32.gmra.mrb[6].mxu1 %v172_v18  ;;  %v680_v45 = vld [vmem:[#allocation9 + $0x130] sm:$0xff]  ;;  %357 = vmatmul.mubr.f32.gmra.mrb[8].mxu0 %v171_v1  ;;  %v681_v47 = vld [vmem:[#allocation9 + $0x138] sm:$0xff]  ;;  %v699_v51 = vld [vmem:[#allocation9 + $0x1c8] sm:$0xff]  ;;  %v1460_v54 = vpack.c.bf16 %v649_v44, %v648_v43 }
  0x6b   :  { %501 = vmatprep.mubr.f32.mxu1 %v189_v22  ;;  %361 = vmatprep.mubr.f32.mxu0 %v1764_v2  ;;  %v174_v52 = vld [vmem:[#allocation2 + $0x70] sm:$0xff]  ;;  %v191_v53 = vld [vmem:[#allocation2 + $0x82] sm:$0xff]  ;;  %v1492_v55 = vpack.c.bf16 %v681_v47, %v680_v45  ;;  %v1494_v60 = vpack.c.bf16 %v699_v51, %v698_v50  ;;  %v669_v63 = vld [vmem:[#allocation9 + $0xd8] sm:$0xff] }
  0x6c   :  { %1457 = vmatpush3.bf16.msra.mxu0 %v1456_v40  ;;  %1489 = vmatpush3.bf16.msra.mxu1 %v1488_v41  ;;  %v650_v57 = vld [vmem:[#allocation9 + $0x40] sm:$0xff]  ;;  %v651_v58 = vld [vmem:[#allocation9 + $0x48] sm:$0xff]  ;;  %v668_v62 = vld [vmem:[#allocation9 + $0xd0] sm:$0xff] }
  0x6d   :  { %1459 = vmatprep.subr.bf16.mxu0 %v1458_v42  ;;  %v682_v59 = vld [vmem:[#allocation9 + $0x140] sm:$0xff]  ;;  %1491 = vmatprep.subr.bf16.mxu1 %v1490_v46  ;;  %v683_v61 = vld [vmem:[#allocation9 + $0x148] sm:$0xff]  ;;  %v700_v1 = vld [vmem:[#allocation9 + $0x1d0] sm:$0xff]  ;;  %v1464_v4 = vpack.c.bf16 %v651_v58, %v650_v57  ;;  %v1466_v7 = vpack.c.bf16 %v669_v63, %v668_v62 }
  0x6e   :  { %502 = vmatmul.mubr.f32.gmra.mrb[8].mxu1 %v173_v38  ;;  %362 = vmatmul.mubr.f32.gmra.mrb[10].mxu0 %v172_v18  ;;  %v701_v2 = vld [vmem:[#allocation9 + $0x1d8] sm:$0xff]  ;;  %v175_v3 = vld [vmem:[#allocation2 + $0x80] sm:$0xff]  ;;  %v1496_v6 = vpack.c.bf16 %v683_v61, %v682_v59  ;;  %v652_v8 = vld [vmem:[#allocation9 + $0x50] sm:$0xff] }
  0x6f   :  { %506 = vmatprep.mubr.f32.mxu1 %v190_v39  ;;  %366 = vmatprep.mubr.f32.mxu0 %v189_v22  ;;  %v1768_v5 = vld [vmem:[#allocation2 + $0x92] sm:$0xff]  ;;  %v1498_v10 = vpack.c.bf16 %v701_v2, %v700_v1  ;;  %v1771_v13 = vld [vmem:[#allocation2 + $0xa2] sm:$0xff]  ;;  %v1785_v58 = vld [vmem:[%s1849_s2] ss:$0 sm:$0xff] }
  0x70   :  { %1461 = vmatpush3.bf16.msra.mxu0 %v1460_v54  ;;  %1493 = vmatpush3.bf16.msra.mxu1 %v1492_v55  ;;  %v653_v9 = vld [vmem:[#allocation9 + $0x58] sm:$0xff]  ;;  %v684_v11 = vld [vmem:[#allocation9 + $0x150] sm:$0xff]  ;;  %v193_v15 = vld [vmem:[#allocation2 + $0xc2] sm:$0xff] }
  0x71   :  { %1463 = vmatprep.subr.bf16.mxu0 %v1462_v56  ;;  %1495 = vmatprep.subr.bf16.mxu1 %v1494_v60  ;;  %v685_v12 = vld [vmem:[#allocation9 + $0x158] sm:$0xff]  ;;  %v1468_v14 = vpack.c.bf16 %v653_v9, %v652_v8  ;;  %v177_v17 = vld [vmem:[#allocation2 + $0xc0] sm:$0xff]  ;;  %v145_v20 = vld [vmem:[#allocation2 + $0xb0] sm:$0xff] }
  0x72   :  { %507 = vmatmul.mubr.f32.gmra.mrb[10].mxu1 %v174_v52  ;;  %367 = vmatmul.mubr.f32.gmra.mrb[12].mxu0 %v173_v38  ;;  %v1500_v16 = vpack.c.bf16 %v685_v12, %v684_v11  ;;  %v161_v18 = vld [vmem:[#allocation2 + $0xb2] sm:$0xff]  ;;  %v195_v22 = vld [vmem:[#allocation2 + $0xe2] sm:$0xff] }
  0x73   :  { %511 = vmatprep.mubr.f32.mxu1 %v191_v53  ;;  %371 = vmatprep.mubr.f32.mxu0 %v190_v39  ;;  %v194_v19 = vld [vmem:[#allocation2 + $0xd2] sm:$0xff]  ;;  %v179_v24 = vld [vmem:[#allocation2 + $0xe0] sm:$0xff]  ;;  %v671_v35 = vld [vmem:[#allocation9 + $0xe8] sm:$0xff] }
  0x74   :  { %1465 = vmatpush3.bf16.msra.mxu0 %v1464_v4  ;;  %1497 = vmatpush3.bf16.msra.mxu1 %v1496_v6  ;;  %v178_v21 = vld [vmem:[#allocation2 + $0xd0] sm:$0xff]  ;;  %v197_v27 = vld [vmem:[#allocation2 + $0x102] sm:$0xff]  ;;  %v673_v41 = vld [vmem:[#allocation9 + $0xf8] sm:$0xff] }
  0x75   :  { %1467 = vmatprep.subr.bf16.mxu0 %v1466_v7  ;;  %1499 = vmatprep.subr.bf16.mxu1 %v1498_v10  ;;  %v196_v25 = vld [vmem:[#allocation2 + $0xf2] sm:$0xff]  ;;  %v181_v28 = vld [vmem:[#allocation2 + $0x100] sm:$0xff]  ;;  %v655_v38 = vld [vmem:[#allocation9 + $0x68] sm:$0xff] }
  0x76   :  { %512 = vmatmul.mubr.f32.gmra.mrb[12].mxu1 %v175_v3  ;;  %372 = vmatmul.mubr.f32.gmra.mrb[14].mxu0 %v174_v52  ;;  %v180_v26 = vld [vmem:[#allocation2 + $0xf0] sm:$0xff]  ;;  %v199_v31 = vld [vmem:[#allocation2 + $0x122] sm:$0xff]  ;;  %v657_v44 = vld [vmem:[#allocation9 + $0x78] sm:$0xff] }
  0x77   :  { %516 = vmatprep.mubr.f32.mxu1 %v1768_v5  ;;  %376 = vmatprep.mubr.f32.mxu0 %v1771_v13  ;;  %v198_v29 = vld [vmem:[#allocation2 + $0x112] sm:$0xff]  ;;  %v183_v32 = vld [vmem:[#allocation2 + $0x120] sm:$0xff]  ;;  %v703_v46 = vld [vmem:[#allocation9 + $0x1e8] sm:$0xff] }
  0x78   :  { %1469 = vmatpush3.bf16.msra.mxu0 %v1468_v14  ;;  %1501 = vmatpush3.bf16.msra.mxu1 %v1500_v16  ;;  %v182_v30 = vld [vmem:[#allocation2 + $0x110] sm:$0xff]  ;;  %v670_v34 = vld [vmem:[#allocation9 + $0xe0] sm:$0xff]  ;;  %v687_v50 = vld [vmem:[#allocation9 + $0x168] sm:$0xff] }
  0x79   :  { %v1776_v33 = vld [vmem:[#allocation2 + $0x132] sm:$0xff]  ;;  %v1470_v36 = vpack.c.bf16 %v671_v35, %v670_v34  ;;  %v654_v37 = vld [vmem:[#allocation9 + $0x60] sm:$0xff] }
  0x7a   :  { %517 = vmatmul.mubr.f32.gmra.mrb[14].mxu1 %v1617_v0  ;;  %377 = vmatmul.mubr.f32.gmra.mrb[16].mxu0 %v1617_v0  ;;  %v1472_v39 = vpack.c.bf16 %v655_v38, %v654_v37  ;;  %v672_v40 = vld [vmem:[#allocation9 + $0xf0] sm:$0xff]  ;;  %v702_v45 = vld [vmem:[#allocation9 + $0x1e0] sm:$0xff]  ;;  %v705_v52 = vld [vmem:[#allocation9 + $0x1f8] sm:$0xff] }
  0x7b   :  { %521 = vmatprep.mubr.f32.mxu1 %v193_v15  ;;  %381 = vmatprep.mubr.f32.mxu0 %v161_v18  ;;  %v1474_v42 = vpack.c.bf16 %v673_v41, %v672_v40  ;;  %v656_v43 = vld [vmem:[#allocation9 + $0x70] sm:$0xff]  ;;  %v686_v47 = vld [vmem:[#allocation9 + $0x160] sm:$0xff]  ;;  %v1502_v49 = vpack.c.bf16 %v703_v46, %v702_v45  ;;  %v689_v55 = vld [vmem:[#allocation9 + $0x178] sm:$0xff] }
  0x7c   :  { %1471 = vmatprep.subr.bf16.mxu0 %v1470_v36  ;;  %v1476_v48 = vpack.c.bf16 %v657_v44, %v656_v43  ;;  %v704_v51 = vld [vmem:[#allocation9 + $0x1f0] sm:$0xff] }
  0x7d   :  { %1473 = vmatpush3.bf16.msra.mxu0 %v1472_v39  ;;  %1503 = vmatprep.subr.bf16.mxu1 %v1502_v49  ;;  %v1506_v53 = vpack.c.bf16 %v705_v52, %v704_v51  ;;  %v688_v54 = vld [vmem:[#allocation9 + $0x170] sm:$0xff] }
  0x7e   :  { %522 = vmatmul.mubr.f32.gmra.mrb[16].mxu1 %v177_v17  ;;  %382 = vmatmul.mubr.f32.gmra.mrb[18].mxu0 %v145_v20  ;;  %v1508_v56 = vpack.c.bf16 %v689_v55, %v688_v54 }
  0x7f   :  { %526 = vmatprep.mubr.f32.mxu1 %v194_v19  ;;  %386 = vmatprep.mubr.f32.mxu0 %v193_v15 }
  0x80   :  { %1475 = vmatprep.subr.bf16.mxu0 %v1474_v42 }
  0x81   :  { %1477 = vmatpush3.bf16.msra.mxu0 %v1476_v48 }
  0x82   :  { %527 = vmatmul.mubr.f32.gmra.mrb[18].mxu1 %v178_v21  ;;  %387 = vmatmul.mubr.f32.gmra.mrb[20].mxu0 %v177_v17 }
  0x83   :  { %531 = vmatprep.mubr.f32.mxu1 %v195_v22  ;;  %391 = vmatprep.mubr.f32.mxu0 %v194_v19 }
  0x86   :  { %532 = vmatmul.mubr.f32.gmra.mrb[20].mxu1 %v179_v24  ;;  %392 = vmatmul.mubr.f32.gmra.mrb[22].mxu0 %v178_v21 }
  0x87   :  { %536 = vmatprep.mubr.f32.mxu1 %v196_v25  ;;  %396 = vmatprep.mubr.f32.mxu0 %v195_v22 }
  0x8a   :  { %537 = vmatmul.mubr.f32.gmra.mrb[22].mxu1 %v180_v26  ;;  %397 = vmatmul.mubr.f32.gmra.mrb[24].mxu0 %v179_v24 }
  0x8b   :  { %541 = vmatprep.mubr.f32.mxu1 %v197_v27  ;;  %401 = vmatprep.mubr.f32.mxu0 %v196_v25 }
  0x8e   :  { %542 = vmatmul.mubr.f32.gmra.mrb[24].mxu1 %v181_v28  ;;  %402 = vmatmul.mubr.f32.gmra.mrb[26].mxu0 %v180_v26 }
  0x8f   :  { %546 = vmatprep.mubr.f32.mxu1 %v198_v29  ;;  %406 = vmatprep.mubr.f32.mxu0 %v197_v27 }
  0x92   :  { %547 = vmatmul.mubr.f32.gmra.mrb[26].mxu1 %v182_v30  ;;  %407 = vmatmul.mubr.f32.gmra.mrb[28].mxu0 %v181_v28 }
  0x93   :  { %551 = vmatprep.mubr.f32.mxu1 %v199_v31  ;;  %411 = vmatprep.mubr.f32.mxu0 %v198_v29 }
  0x96   :  { %552 = vmatmul.mubr.f32.gmra.mrb[28].mxu1 %v183_v32  ;;  %412 = vmatmul.mubr.f32.gmra.mrb[30].mxu0 %v182_v30 }
  0x97   :  { %556 = vmatprep.mubr.f32.mxu1 %v1776_v33  ;;  %777 = vmatprep.mubr.f32.mxu0 %v1743_v23  ;;  %v1504_v23 = vpack.c.bf16 %v687_v50, %v686_v47 }
  0x99   :  { %1505 = vmatpush3.bf16.msra.mxu1 %v1504_v23 }
  0x9a   :  { %557 = vmatmul.mubr.f32.gmra.mrb[30].mxu1 %v1617_v0  ;;  %778 = vmatmul.mubr.f32.vlgmr.msra.gmra.mrb[32].mxu0 %v1617_v0 }
  0x9b   :  { %1507 = vmatprep.subr.bf16.mxu1 %v1506_v53 }
  0x9d   :  { %1509 = vmatpush3.bf16.msra.mxu1 %v1508_v56 }
 0x12d   :  { %v1094_v57 = vpop.f32.mrb[0].mxu0 }
 0x12e   :  { %v1095_v59 = vpop.f32.mrb[1].mxu0 }
 0x12f   :  { %v1096_v61 = vadd.f32 %v1095_v59, %v1094_v57 }
 0x131   :  { %v1174_v60 = vpop.f32.mrb[0].mxu1  ;;  %v339_v0 = vadd.f32 %v1096_v61, %v1785_v58  ;;  %v1097_v1 = vpop.f32.mrb[2].mxu0 }
 0x132   :  { %v1175_v62 = vpop.f32.mrb[1].mxu1  ;;  %v1098_v2 = vpop.f32.mrb[3].mxu0 }
 0x133   :  { %v1176_v63 = vadd.f32 %v1175_v62, %v1174_v60  ;;  %v1099_v6 = vadd.f32 %v1098_v2, %v1097_v1 }
 0x135   :  { %v1177_v3 = vpop.f32.mrb[2].mxu1  ;;  %v484_v4 = vadd.f32 %v1176_v63, %v339_v0  ;;  %v344_v9 = vadd.f32 %v1099_v6, %v1785_v58  ;;  %v1100_v10 = vpop.f32.mrb[4].mxu0 }
 0x136   :  { %v1178_v7 = vpop.f32.mrb[3].mxu1  ;;  %v1101_v11 = vpop.f32.mrb[5].mxu0 }
 0x137   :  { %v1179_v8 = vadd.f32 %v1178_v7, %v1177_v3  ;;  %562 = vst [vmem:[#allocation2 + $0x11] sm:$0xff] %v484_v4  ;;  %v1102_v15 = vadd.f32 %v1101_v11, %v1100_v10 }
 0x139   :  { %v1180_v12 = vpop.f32.mrb[4].mxu1  ;;  %v489_v14 = vadd.f32 %v1179_v8, %v344_v9  ;;  %v349_v18 = vadd.f32 %v1102_v15, %v1785_v58  ;;  %v1103_v19 = vpop.f32.mrb[6].mxu0 }
 0x13a   :  { %v1181_v16 = vpop.f32.mrb[5].mxu1  ;;  %v1104_v20 = vpop.f32.mrb[7].mxu0 }
 0x13b   :  { %v1182_v17 = vadd.f32 %v1181_v16, %v1180_v12  ;;  %563 = vst [vmem:[#allocation2 + $0x21] sm:$0xff] %v489_v14  ;;  %v1105_v24 = vadd.f32 %v1104_v20, %v1103_v19 }
 0x13d   :  { %v1183_v21 = vpop.f32.mrb[6].mxu1  ;;  %v494_v22 = vadd.f32 %v1182_v17, %v349_v18  ;;  %v354_v29 = vadd.f32 %v1105_v24, %v1785_v58  ;;  %v1106_v30 = vpop.f32.mrb[8].mxu0 }
 0x13e   :  { %v1184_v25 = vpop.f32.mrb[7].mxu1  ;;  %v595_v27 = vld [vmem:[#allocation2 + $0x12] sm:$0xff]  ;;  %v1107_v31 = vpop.f32.mrb[9].mxu0 }
 0x13f   :  { %v1185_v26 = vadd.f32 %v1184_v25, %v1183_v21  ;;  %v579_v28 = vld [vmem:[#allocation2 + $0x10] sm:$0xff]  ;;  %564 = vst [vmem:[#allocation2 + $0x31] sm:$0xff] %v494_v22  ;;  %782 = vmatprep.mubr.f32.mxu0 %v595_v27  ;;  %v1108_v35 = vadd.f32 %v1107_v31, %v1106_v30 }
 0x140   :  { %783 = vmatmul.mubr.f32.gmra.mrb[34].mxu0 %v579_v28 }
 0x141   :  { %v1186_v32 = vpop.f32.mrb[8].mxu1  ;;  %v499_v34 = vadd.f32 %v1185_v26, %v354_v29  ;;  %v359_v40 = vadd.f32 %v1108_v35, %v1785_v58  ;;  %v1109_v41 = vpop.f32.mrb[10].mxu0 }
 0x142   :  { %v1187_v36 = vpop.f32.mrb[9].mxu1  ;;  %v596_v38 = vld [vmem:[#allocation2 + $0x22] sm:$0xff]  ;;  %v1110_v42 = vpop.f32.mrb[11].mxu0 }
 0x143   :  { %v1188_v37 = vadd.f32 %v1187_v36, %v1186_v32  ;;  %v580_v39 = vld [vmem:[#allocation2 + $0x20] sm:$0xff]  ;;  %565 = vst [vmem:[#allocation2 + $0x41] sm:$0xff] %v499_v34  ;;  %787 = vmatprep.mubr.f32.mxu0 %v596_v38  ;;  %922 = vmatprep.mubr.f32.mxu1 %v596_v38  ;;  %v1111_v45 = vadd.f32 %v1110_v42, %v1109_v41 }
 0x144   :  { %788 = vmatmul.mubr.f32.gmra.mrb[36].mxu0 %v580_v39  ;;  %923 = vmatmul.mubr.f32.vlgmr.msra.gmra.mrb[32].mxu1 %v580_v39 }
 0x145   :  { %v1189_v43 = vpop.f32.mrb[10].mxu1  ;;  %v504_v44 = vadd.f32 %v1188_v37, %v359_v40  ;;  %v364_v50 = vadd.f32 %v1111_v45, %v1785_v58  ;;  %v1112_v23 = vpop.f32.mrb[12].mxu0 }
 0x146   :  { %v1190_v46 = vpop.f32.mrb[11].mxu1  ;;  %v597_v48 = vld [vmem:[#allocation2 + $0x32] sm:$0xff]  ;;  %v1113_v51 = vpop.f32.mrb[13].mxu0 }
 0x147   :  { %v1191_v47 = vadd.f32 %v1190_v46, %v1189_v43  ;;  %v581_v49 = vld [vmem:[#allocation2 + $0x30] sm:$0xff]  ;;  %566 = vst [vmem:[#allocation2 + $0x51] sm:$0xff] %v504_v44  ;;  %792 = vmatprep.mubr.f32.mxu0 %v597_v48  ;;  %927 = vmatprep.mubr.f32.mxu1 %v597_v48  ;;  %v1114_v54 = vadd.f32 %v1113_v51, %v1112_v23  ;;  %v1799_v44 = vld [vmem:[#allocation2] sm:$0xff] }
 0x148   :  { %793 = vmatmul.mubr.f32.gmra.mrb[38].mxu0 %v581_v49  ;;  %928 = vmatmul.mubr.f32.gmra.mrb[34].mxu1 %v581_v49 }
 0x149   :  { %v1192_v52 = vpop.f32.mrb[12].mxu1  ;;  %v509_v53 = vadd.f32 %v1191_v47, %v364_v50  ;;  %v369_v60 = vadd.f32 %v1114_v54, %v1785_v58  ;;  %v1115_v61 = vpop.f32.mrb[14].mxu0 }
 0x14a   :  { %v1193_v55 = vpop.f32.mrb[13].mxu1  ;;  %v598_v57 = vld [vmem:[#allocation2 + $0x42] sm:$0xff]  ;;  %v1116_v62 = vpop.f32.mrb[15].mxu0 }
 0x14b   :  { %v1194_v56 = vadd.f32 %v1193_v55, %v1192_v52  ;;  %v582_v59 = vld [vmem:[#allocation2 + $0x40] sm:$0xff]  ;;  %567 = vst [vmem:[#allocation2 + $0x61] sm:$0xff] %v509_v53  ;;  %797 = vmatprep.mubr.f32.mxu0 %v598_v57  ;;  %932 = vmatprep.mubr.f32.mxu1 %v598_v57  ;;  %v1117_v1 = vadd.f32 %v1116_v62, %v1115_v61 }
 0x14c   :  { %798 = vmatmul.mubr.f32.gmra.mrb[40].mxu0 %v582_v59  ;;  %933 = vmatmul.mubr.f32.gmra.mrb[36].mxu1 %v582_v59 }
 0x14d   :  { %v1195_v63 = vpop.f32.mrb[14].mxu1  ;;  %v514_v0 = vadd.f32 %v1194_v56, %v369_v60  ;;  %v374_v7 = vadd.f32 %v1117_v1, %v1785_v58  ;;  %v1118_v8 = vpop.f32.mrb[16].mxu0 }
 0x14e   :  { %v1196_v2 = vpop.f32.mrb[15].mxu1  ;;  %v599_v4 = vld [vmem:[#allocation2 + $0x52] sm:$0xff]  ;;  %v1119_v9 = vpop.f32.mrb[17].mxu0 }
 0x14f   :  { %v1197_v3 = vadd.f32 %v1196_v2, %v1195_v63  ;;  %v583_v6 = vld [vmem:[#allocation2 + $0x50] sm:$0xff]  ;;  %568 = vst [vmem:[#allocation2 + $0x71] sm:$0xff] %v514_v0  ;;  %802 = vmatprep.mubr.f32.mxu0 %v599_v4  ;;  %937 = vmatprep.mubr.f32.mxu1 %v599_v4  ;;  %v1120_v12 = vadd.f32 %v1119_v9, %v1118_v8 }
 0x150   :  { %803 = vmatmul.mubr.f32.gmra.mrb[42].mxu0 %v583_v6  ;;  %938 = vmatmul.mubr.f32.gmra.mrb[38].mxu1 %v583_v6 }
 0x151   :  { %v1198_v10 = vpop.f32.mrb[16].mxu1  ;;  %v519_v11 = vadd.f32 %v1197_v3, %v374_v7  ;;  %v379_v18 = vadd.f32 %v1120_v12, %v1785_v58  ;;  %v1121_v19 = vpop.f32.mrb[18].mxu0 }
 0x152   :  { %v1199_v14 = vpop.f32.mrb[17].mxu1  ;;  %v600_v16 = vld [vmem:[#allocation2 + $0x62] sm:$0xff]  ;;  %v1122_v20 = vpop.f32.mrb[19].mxu0 }
 0x153   :  { %v1200_v15 = vadd.f32 %v1199_v14, %v1198_v10  ;;  %v584_v17 = vld [vmem:[#allocation2 + $0x60] sm:$0xff]  ;;  %569 = vst [vmem:[#allocation2 + $0x81] sm:$0xff] %v519_v11  ;;  %807 = vmatprep.mubr.f32.mxu0 %v600_v16  ;;  %942 = vmatprep.mubr.f32.mxu1 %v600_v16  ;;  %v1123_v24 = vadd.f32 %v1122_v20, %v1121_v19 }
 0x154   :  { %808 = vmatmul.mubr.f32.gmra.mrb[44].mxu0 %v584_v17  ;;  %943 = vmatmul.mubr.f32.gmra.mrb[40].mxu1 %v584_v17 }
 0x155   :  { %v1201_v21 = vpop.f32.mrb[18].mxu1  ;;  %v524_v22 = vadd.f32 %v1200_v15, %v379_v18  ;;  %v384_v29 = vadd.f32 %v1123_v24, %v1785_v58  ;;  %v1124_v30 = vpop.f32.mrb[20].mxu0 }
 0x156   :  { %v1202_v25 = vpop.f32.mrb[19].mxu1  ;;  %v601_v27 = vld [vmem:[#allocation2 + $0x72] sm:$0xff]  ;;  %v1125_v31 = vpop.f32.mrb[21].mxu0 }
 0x157   :  { %v1203_v26 = vadd.f32 %v1202_v25, %v1201_v21  ;;  %v585_v28 = vld [vmem:[#allocation2 + $0x70] sm:$0xff]  ;;  %570 = vst [vmem:[#allocation2 + $0xb1] sm:$0xff] %v524_v22  ;;  %812 = vmatprep.mubr.f32.mxu0 %v601_v27  ;;  %947 = vmatprep.mubr.f32.mxu1 %v601_v27  ;;  %v1126_v35 = vadd.f32 %v1125_v31, %v1124_v30 }
 0x158   :  { %813 = vmatmul.mubr.f32.gmra.mrb[46].mxu0 %v585_v28  ;;  %948 = vmatmul.mubr.f32.gmra.mrb[42].mxu1 %v585_v28 }
 0x159   :  { %v1204_v32 = vpop.f32.mrb[20].mxu1  ;;  %v529_v34 = vadd.f32 %v1203_v26, %v384_v29  ;;  %817 = vmatprep.mubr.f32.mxu0 %v1771_v13  ;;  %v389_v40 = vadd.f32 %v1126_v35, %v1785_v58  ;;  %v1127_v41 = vpop.f32.mrb[22].mxu0 }
 0x15a   :  { %v1205_v36 = vpop.f32.mrb[21].mxu1  ;;  %v632_v38 = vld [vmem:[#allocation2 + $0x82] sm:$0xff]  ;;  %v1128_v42 = vpop.f32.mrb[23].mxu0 }
 0x15b   :  { %v1206_v37 = vadd.f32 %v1205_v36, %v1204_v32  ;;  %v616_v39 = vld [vmem:[#allocation2 + $0x80] sm:$0xff]  ;;  %571 = vst [vmem:[#allocation2 + $0xc1] sm:$0xff] %v529_v34  ;;  %952 = vmatprep.mubr.f32.mxu1 %v632_v38  ;;  %v1129_v46 = vadd.f32 %v1128_v42, %v1127_v41 }
 0x15c   :  { %818 = vmatmul.mubr.f32.gmra.mrb[48].mxu0 %v1799_v44  ;;  %953 = vmatmul.mubr.f32.gmra.mrb[44].mxu1 %v616_v39 }
 0x15d   :  { %v1207_v43 = vpop.f32.mrb[22].mxu1  ;;  %v534_v45 = vadd.f32 %v1206_v37, %v389_v40  ;;  %957 = vmatprep.mubr.f32.mxu1 %v1768_v5  ;;  %v394_v50 = vadd.f32 %v1129_v46, %v1785_v58  ;;  %v1130_v23 = vpop.f32.mrb[24].mxu0  ;;  %v1814_v40 = vld [vmem:[%s1851_s4] ss:$0 sm:$0xff]  ;;  %s1618_s4 = smov [#allocation10]  }
 0x15e   :  { %v1208_v47 = vpop.f32.mrb[23].mxu1  ;;  %v603_v48 = vld [vmem:[#allocation2 + $0xb2] sm:$0xff]  ;;  %v1131_v51 = vpop.f32.mrb[25].mxu0  ;;  %s1047_s8 = sshll.u32 %s1618_s4, 4  ;;  %s1048_s8 = int_to_ptr.vmem [resolvable:$true] %s1047_s8 }
 0x15f   :  { %v1209_v13 = vadd.f32 %v1208_v47, %v1207_v43  ;;  %v587_v49 = vld [vmem:[#allocation2 + $0xb0] sm:$0xff]  ;;  %572 = vst [vmem:[#allocation2 + $0xd1] sm:$0xff] %v534_v45  ;;  %822 = vmatprep.mubr.f32.mxu0 %v603_v48  ;;  %v1132_v54 = vadd.f32 %v1131_v51, %v1130_v23  ;;  %s1584_s9 = scalar_lea.vmem %s1048_s8, 512  ;;  %p1589_p11 = scmp.lt.s32.totalorder %s1048_s8, %s1048_s8 }
 0x160   :  { %823 = vmatmul.mubr.f32.gmra.mrb[50].mxu0 %v587_v49  ;;  %958 = vmatmul.mubr.f32.gmra.mrb[46].mxu1 %v1799_v44  ;;  %p1585_p10 = scmp.ne.s32.totalorder %s1048_s8, %s1584_s9  ;;  %p1590_p12 = scmp.lt.s32.totalorder %s1584_s9, %s1584_s9 }
 0x161   :  { %v1210_v52 = vpop.f32.mrb[24].mxu1  ;;  %v539_v53 = vadd.f32 %v1209_v13, %v394_v50  ;;  %v399_v5 = vadd.f32 %v1132_v54, %v1785_v58  ;;  %v1133_v60 = vpop.f32.mrb[26].mxu0 }
 0x162   :  { %v1211_v55 = vpop.f32.mrb[25].mxu1  ;;  %v604_v57 = vld [vmem:[#allocation2 + $0xc2] sm:$0xff]  ;;  %v1134_v61 = vpop.f32.mrb[27].mxu0  ;;  %p1591_p13 = por %p1590_p12, %p1589_p11 }
 0x163   :  { %v1212_v56 = vadd.f32 %v1211_v55, %v1210_v52  ;;  %v588_v59 = vld [vmem:[#allocation2 + $0xc0] sm:$0xff]  ;;  %573 = vst [vmem:[#allocation2 + $0xe1] sm:$0xff] %v539_v53  ;;  %827 = vmatprep.mubr.f32.mxu0 %v604_v57  ;;  %962 = vmatprep.mubr.f32.mxu1 %v604_v57  ;;  %v1135_v0 = vadd.f32 %v1134_v61, %v1133_v60 }
 0x164   :  { %828 = vmatmul.mubr.f32.gmra.mrb[52].mxu0 %v588_v59  ;;  %963 = vmatmul.mubr.f32.gmra.mrb[48].mxu1 %v588_v59  ;;  %p1592_p0 = pnand %p1591_p13, %p1585_p10 }
 0x165   :  { %v1213_v62 = vpop.f32.mrb[26].mxu1  ;;  %v544_v63 = vadd.f32 %v1212_v56, %v399_v5  ;;  %v404_v6 = vadd.f32 %v1135_v0, %v1785_v58  ;;  %v1136_v7 = vpop.f32.mrb[28].mxu0 }
 0x166   :  { %v1214_v1 = vpop.f32.mrb[27].mxu1  ;;  %v605_v3 = vld [vmem:[#allocation2 + $0xd2] sm:$0xff]  ;;  %v1137_v8 = vpop.f32.mrb[29].mxu0 }
 0x167   :  { %v1215_v2 = vadd.f32 %v1214_v1, %v1213_v62  ;;  %v589_v4 = vld [vmem:[#allocation2 + $0xd0] sm:$0xff]  ;;  %574 = vst [vmem:[#allocation2 + $0xf1] sm:$0xff] %v544_v63  ;;  %832 = vmatprep.mubr.f32.mxu0 %v605_v3  ;;  %967 = vmatprep.mubr.f32.mxu1 %v605_v3  ;;  %v1138_v11 = vadd.f32 %v1137_v8, %v1136_v7 }
 0x168   :  { %833 = vmatmul.mubr.f32.gmra.mrb[54].mxu0 %v589_v4  ;;  %968 = vmatmul.mubr.f32.gmra.mrb[50].mxu1 %v589_v4 }
 0x169   :  { %v1216_v9 = vpop.f32.mrb[28].mxu1  ;;  %v549_v10 = vadd.f32 %v1215_v2, %v404_v6  ;;  %v409_v17 = vadd.f32 %v1138_v11, %v1785_v58  ;;  %v1139_v18 = vpop.f32.mrb[30].mxu0 }
 0x16a   :  { %v1217_v12 = vpop.f32.mrb[29].mxu1  ;;  %v606_v15 = vld [vmem:[#allocation2 + $0xe2] sm:$0xff]  ;;  %v1140_v19 = vpop.f32.mrb[31].mxu0 }
 0x16b   :  { %v1218_v14 = vadd.f32 %v1217_v12, %v1216_v9  ;;  %v590_v16 = vld [vmem:[#allocation2 + $0xe0] sm:$0xff]  ;;  %575 = vst [vmem:[#allocation2 + $0x101] sm:$0xff] %v549_v10  ;;  %837 = vmatprep.mubr.f32.mxu0 %v606_v15  ;;  %972 = vmatprep.mubr.f32.mxu1 %v606_v15  ;;  %v1141_v22 = vadd.f32 %v1140_v19, %v1139_v18 }
 0x16c   :  { %838 = vmatmul.mubr.f32.gmra.mrb[56].mxu0 %v590_v16  ;;  %973 = vmatmul.mubr.f32.gmra.mrb[52].mxu1 %v590_v16 }
 0x16d   :  { %v1219_v20 = vpop.f32.mrb[30].mxu1  ;;  %v554_v21 = vadd.f32 %v1218_v14, %v409_v17  ;;  %v414_v28 = vadd.f32 %v1141_v22, %v1785_v58  ;;  %v1254_v36 = vpop.f32.mrb[32].mxu0 }
 0x16e   :  { %v1220_v24 = vpop.f32.mrb[31].mxu1  ;;  %v607_v26 = vld [vmem:[#allocation2 + $0xf2] sm:$0xff]  ;;  %v1255_v37 = vpop.f32.mrb[33].mxu0 }
 0x16f   :  { %v1221_v25 = vadd.f32 %v1220_v24, %v1219_v20  ;;  %v591_v27 = vld [vmem:[#allocation2 + $0xf0] sm:$0xff]  ;;  %576 = vst [vmem:[#allocation2 + $0x111] sm:$0xff] %v554_v21  ;;  %842 = vmatprep.mubr.f32.mxu0 %v607_v26  ;;  %977 = vmatprep.mubr.f32.mxu1 %v607_v26  ;;  %v1256_v38 = vadd.f32 %v1255_v37, %v1254_v36 }
 0x170   :  { %843 = vmatmul.mubr.f32.gmra.mrb[58].mxu0 %v591_v27  ;;  %978 = vmatmul.mubr.f32.gmra.mrb[54].mxu1 %v591_v27 }
 0x171   :  { %v559_v29 = vadd.f32 %v1221_v25, %v414_v28  ;;  %v780_v43 = vadd.f32 %v1256_v38, %v1814_v40 }
 0x172   :  { %v608_v30 = vld [vmem:[#allocation2 + $0x102] sm:$0xff] }
 0x173   :  { %v592_v31 = vld [vmem:[#allocation2 + $0x100] sm:$0xff]  ;;  %577 = vst [vmem:[#allocation2 + $0x121] sm:$0xff] %v559_v29  ;;  %847 = vmatprep.mubr.f32.mxu0 %v608_v30  ;;  %982 = vmatprep.mubr.f32.mxu1 %v608_v30 }
 0x174   :  { %848 = vmatmul.mubr.f32.gmra.mrb[60].mxu0 %v592_v31  ;;  %983 = vmatmul.mubr.f32.gmra.mrb[56].mxu1 %v592_v31 }
 0x176   :  { %v609_v32 = vld [vmem:[#allocation2 + $0x112] sm:$0xff] }
 0x177   :  { %v593_v34 = vld [vmem:[#allocation2 + $0x110] sm:$0xff]  ;;  %852 = vmatprep.mubr.f32.mxu0 %v609_v32  ;;  %987 = vmatprep.mubr.f32.mxu1 %v609_v32 }
 0x178   :  { %853 = vmatmul.mubr.f32.gmra.mrb[62].mxu0 %v593_v34  ;;  %988 = vmatmul.mubr.f32.gmra.mrb[58].mxu1 %v593_v34 }
 0x17a   :  { %v640_v35 = vld [vmem:[#allocation2 + $0x122] sm:$0xff] }
 0x17b   :  { %v624_v58 = vld [vmem:[#allocation2 + $0x120] sm:$0xff]  ;;  %992 = vmatprep.mubr.f32.mxu1 %v640_v35 }
 0x17c   :  { %993 = vmatmul.mubr.f32.gmra.mrb[60].mxu1 %v624_v58 }
 0x17d   :  { %997 = vmatprep.mubr.f32.mxu1 %v1776_v33 }
 0x180   :  { %998 = vmatmul.mubr.f32.gmra.mrb[62].mxu1 %v1799_v44 }
 0x213   :  { %v1257_v39 = vpop.f32.mrb[34].mxu0 }
 0x214   :  { %v1258_v41 = vpop.f32.mrb[35].mxu0 }
 0x215   :  { %v1259_v42 = vadd.f32 %v1258_v41, %v1257_v39 }
 0x217   :  { %v1260_v45 = vpop.f32.mrb[36].mxu0  ;;  %v1334_v46 = vpop.f32.mrb[32].mxu1  ;;  %v785_v52 = vadd.f32 %v1259_v42, %v1814_v40 }
 0x218   :  { %v1261_v47 = vpop.f32.mrb[37].mxu0  ;;  %v1335_v13 = vpop.f32.mrb[33].mxu1 }
 0x219   :  { %v1262_v33 = vadd.f32 %v1261_v47, %v1260_v45  ;;  %v1336_v48 = vadd.f32 %v1335_v13, %v1334_v46 }
 0x21b   :  { %v925_v44 = vadd.f32 %v1336_v48, %v780_v43  ;;  %v1263_v49 = vpop.f32.mrb[38].mxu0  ;;  %v1337_v50 = vpop.f32.mrb[34].mxu1  ;;  %v790_v60 = vadd.f32 %v1262_v33, %v1814_v40 }
 0x21c   :  { %v1264_v23 = vpop.f32.mrb[39].mxu0  ;;  %v1338_v51 = vpop.f32.mrb[35].mxu1 }
 0x21d   :  { %v1265_v53 = vadd.f32 %v1264_v23, %v1263_v49  ;;  %v1339_v54 = vadd.f32 %v1338_v51, %v1337_v50 }
 0x21f   :  { %v930_v55 = vadd.f32 %v1339_v54, %v785_v52  ;;  %v1266_v56 = vpop.f32.mrb[40].mxu0  ;;  %v1340_v57 = vpop.f32.mrb[36].mxu1  ;;  %v795_v6 = vadd.f32 %v1265_v53, %v1814_v40 }
 0x220   :  { %v1267_v59 = vpop.f32.mrb[41].mxu0  ;;  %v1341_v5 = vpop.f32.mrb[37].mxu1 }
 0x221   :  { %v1003_v61 = vmax.f32 %v925_v44, %v930_v55  ;;  %v1268_v62 = vadd.f32 %v1267_v59, %v1266_v56  ;;  %v1342_v63 = vadd.f32 %v1341_v5, %v1340_v57 }
 0x223   :  { %1011 = vst [vmem:[#allocation3] sm:$0xff] %v1003_v61  ;;  %v935_v0 = vadd.f32 %v1342_v63, %v790_v60  ;;  %v1269_v1 = vpop.f32.mrb[42].mxu0  ;;  %v1343_v2 = vpop.f32.mrb[38].mxu1  ;;  %v800_v15 = vadd.f32 %v1268_v62, %v1814_v40 }
 0x224   :  { %v1270_v3 = vpop.f32.mrb[43].mxu0  ;;  %v1344_v4 = vpop.f32.mrb[39].mxu1 }
 0x225   :  { %v1271_v7 = vadd.f32 %v1270_v3, %v1269_v1  ;;  %v1345_v8 = vadd.f32 %v1344_v4, %v1343_v2 }
 0x227   :  { %v940_v9 = vadd.f32 %v1345_v8, %v795_v6  ;;  %v1272_v10 = vpop.f32.mrb[44].mxu0  ;;  %v1346_v11 = vpop.f32.mrb[40].mxu1  ;;  %v805_v25 = vadd.f32 %v1271_v7, %v1814_v40 }
 0x228   :  { %v1273_v12 = vpop.f32.mrb[45].mxu0  ;;  %v1347_v14 = vpop.f32.mrb[41].mxu1 }
 0x229   :  { %v1004_v16 = vmax.f32 %v935_v0, %v940_v9  ;;  %v1274_v17 = vadd.f32 %v1273_v12, %v1272_v10  ;;  %v1348_v18 = vadd.f32 %v1347_v14, %v1346_v11 }
 0x22b   :  { %1012 = vst [vmem:[#allocation3 + $0x8] sm:$0xff] %v1004_v16  ;;  %v945_v19 = vadd.f32 %v1348_v18, %v800_v15  ;;  %v1275_v20 = vpop.f32.mrb[46].mxu0  ;;  %v1349_v21 = vpop.f32.mrb[42].mxu1  ;;  %v810_v34 = vadd.f32 %v1274_v17, %v1814_v40 }
 0x22c   :  { %v1276_v22 = vpop.f32.mrb[47].mxu0  ;;  %v1350_v24 = vpop.f32.mrb[43].mxu1 }
 0x22d   :  { %v1277_v26 = vadd.f32 %v1276_v22, %v1275_v20  ;;  %v1351_v27 = vadd.f32 %v1350_v24, %v1349_v21 }
 0x22f   :  { %v950_v28 = vadd.f32 %v1351_v27, %v805_v25  ;;  %v1352_v29 = vpop.f32.mrb[44].mxu1  ;;  %v1278_v30 = vpop.f32.mrb[48].mxu0  ;;  %v815_v47 = vadd.f32 %v1277_v26, %v1814_v40 }
 0x230   :  { %v1353_v31 = vpop.f32.mrb[45].mxu1  ;;  %v1279_v32 = vpop.f32.mrb[49].mxu0 }
 0x231   :  { %v1005_v35 = vmax.f32 %v945_v19, %v950_v28  ;;  %v1354_v58 = vadd.f32 %v1353_v31, %v1352_v29  ;;  %v1280_v36 = vadd.f32 %v1279_v32, %v1278_v30 }
 0x232   :  { %v1019_v37 = vld [vmem:[#allocation3] ss:$2 sm:$0xff]  ;;  %v1027_v38 = vld [vmem:[#allocation3 + $0x1] ss:$2 sm:$0xff] }
 0x233   :  { %1013 = vst [vmem:[#allocation3 + $0x10] sm:$0xff] %v1005_v35  ;;  %v955_v39 = vadd.f32 %v1354_v58, %v810_v34  ;;  %v1281_v41 = vpop.f32.mrb[50].mxu0  ;;  %v1355_v42 = vpop.f32.mrb[46].mxu1  ;;  %v1034_v43 = vmax.f32 %v1019_v37, %v1027_v38  ;;  %v820_v48 = vadd.f32 %v1280_v36, %v1814_v40 }
 0x234   :  { %v1282_v45 = vpop.f32.mrb[51].mxu0  ;;  %v1356_v46 = vpop.f32.mrb[47].mxu1 }
 0x235   :  { %v1283_v13 = vadd.f32 %v1282_v45, %v1281_v41  ;;  %v1357_v33 = vadd.f32 %v1356_v46, %v1355_v42  ;;  %1038 = vst [vmem:[#allocation10] sm:$0xff] %v1034_v43 }
 0x237   :  { %v960_v44 = vadd.f32 %v1357_v33, %v815_v47  ;;  %v1284_v49 = vpop.f32.mrb[52].mxu0  ;;  %v1358_v50 = vpop.f32.mrb[48].mxu1  ;;  %v825_v60 = vadd.f32 %v1283_v13, %v1814_v40 }
 0x238   :  { %v1285_v23 = vpop.f32.mrb[53].mxu0  ;;  %v1359_v51 = vpop.f32.mrb[49].mxu1 }
 0x239   :  { %v1006_v52 = vmax.f32 %v955_v39, %v960_v44  ;;  %v1286_v53 = vadd.f32 %v1285_v23, %v1284_v49  ;;  %v1360_v54 = vadd.f32 %v1359_v51, %v1358_v50 }
 0x23b   :  { %1014 = vst [vmem:[#allocation3 + $0x18] sm:$0xff] %v1006_v52  ;;  %v965_v55 = vadd.f32 %v1360_v54, %v820_v48  ;;  %v1287_v56 = vpop.f32.mrb[54].mxu0  ;;  %v1361_v57 = vpop.f32.mrb[50].mxu1  ;;  %v830_v4 = vadd.f32 %v1286_v53, %v1814_v40 }
 0x23c   :  { %v1288_v59 = vpop.f32.mrb[55].mxu0  ;;  %v1362_v5 = vpop.f32.mrb[51].mxu1 }
 0x23d   :  { %v1289_v61 = vadd.f32 %v1288_v59, %v1287_v56  ;;  %v1363_v62 = vadd.f32 %v1362_v5, %v1361_v57 }
 0x23f   :  { %v970_v63 = vadd.f32 %v1363_v62, %v825_v60  ;;  %v1290_v0 = vpop.f32.mrb[56].mxu0  ;;  %v1364_v1 = vpop.f32.mrb[52].mxu1  ;;  %v835_v18 = vadd.f32 %v1289_v61, %v1814_v40 }
 0x240   :  { %v1291_v2 = vpop.f32.mrb[57].mxu0  ;;  %v1365_v3 = vpop.f32.mrb[53].mxu1 }
 0x241   :  { %v1007_v6 = vmax.f32 %v965_v55, %v970_v63  ;;  %v1292_v7 = vadd.f32 %v1291_v2, %v1290_v0  ;;  %v1366_v8 = vadd.f32 %v1365_v3, %v1364_v1 }
 0x242   :  { %v1021_v9 = vld [vmem:[#allocation3 + $0x10] ss:$2 sm:$0xff]  ;;  %v1029_v10 = vld [vmem:[#allocation3 + $0x11] ss:$2 sm:$0xff] }
 0x243   :  { %1015 = vst [vmem:[#allocation3 + $0x20] sm:$0xff] %v1007_v6  ;;  %v975_v11 = vadd.f32 %v1366_v8, %v830_v4  ;;  %v1293_v12 = vpop.f32.mrb[58].mxu0  ;;  %v1367_v14 = vpop.f32.mrb[54].mxu1  ;;  %v1035_v15 = vmax.f32 %v1021_v9, %v1029_v10  ;;  %v840_v27 = vadd.f32 %v1292_v7, %v1814_v40 }
 0x244   :  { %v1294_v16 = vpop.f32.mrb[59].mxu0  ;;  %v1368_v17 = vpop.f32.mrb[55].mxu1 }
 0x245   :  { %v1295_v19 = vadd.f32 %v1294_v16, %v1293_v12  ;;  %v1369_v20 = vadd.f32 %v1368_v17, %v1367_v14  ;;  %1039 = vst [vmem:[#allocation10 + $0x8] sm:$0xff] %v1035_v15 }
 0x247   :  { %v980_v21 = vadd.f32 %v1369_v20, %v835_v18  ;;  %v1296_v22 = vpop.f32.mrb[60].mxu0  ;;  %v1370_v24 = vpop.f32.mrb[56].mxu1  ;;  %v845_v36 = vadd.f32 %v1295_v19, %v1814_v40 }
 0x248   :  { %v1297_v25 = vpop.f32.mrb[61].mxu0  ;;  %v1371_v26 = vpop.f32.mrb[57].mxu1 }
 0x249   :  { %v1008_v28 = vmax.f32 %v975_v11, %v980_v21  ;;  %v1298_v29 = vadd.f32 %v1297_v25, %v1296_v22  ;;  %v1372_v30 = vadd.f32 %v1371_v26, %v1370_v24 }
 0x24b   :  { %1016 = vst [vmem:[#allocation3 + $0x28] sm:$0xff] %v1008_v28  ;;  %v985_v31 = vadd.f32 %v1372_v30, %v840_v27  ;;  %v1299_v32 = vpop.f32.mrb[62].mxu0  ;;  %v1373_v34 = vpop.f32.mrb[58].mxu1  ;;  %v850_v43 = vadd.f32 %v1298_v29, %v1814_v40 }
 0x24c   :  { %v1300_v35 = vpop.f32.mrb[63].mxu0  ;;  %v1374_v58 = vpop.f32.mrb[59].mxu1 }
 0x24d   :  { %v1301_v37 = vadd.f32 %v1300_v35, %v1299_v32  ;;  %v1375_v38 = vadd.f32 %v1374_v58, %v1373_v34 }
 0x24f   :  { %v990_v39 = vadd.f32 %v1375_v38, %v845_v36  ;;  %v1376_v41 = vpop.f32.mrb[60].mxu1  ;;  %v855_v50 = vadd.f32 %v1301_v37, %v1814_v40 }
 0x250   :  { %v1377_v42 = vpop.f32.mrb[61].mxu1 }
 0x251   :  { %v1009_v45 = vmax.f32 %v985_v31, %v990_v39  ;;  %v1378_v46 = vadd.f32 %v1377_v42, %v1376_v41 }
 0x252   :  { %v1023_v47 = vld [vmem:[#allocation3 + $0x20] ss:$2 sm:$0xff]  ;;  %v1031_v13 = vld [vmem:[#allocation3 + $0x21] ss:$2 sm:$0xff] }
 0x253   :  { %1017 = vst [vmem:[#allocation3 + $0x30] sm:$0xff] %v1009_v45  ;;  %v995_v33 = vadd.f32 %v1378_v46, %v850_v43  ;;  %v1379_v48 = vpop.f32.mrb[62].mxu1  ;;  %v1036_v44 = vmax.f32 %v1023_v47, %v1031_v13 }
 0x254   :  { %v1380_v49 = vpop.f32.mrb[63].mxu1 }
 0x255   :  { %v1381_v23 = vadd.f32 %v1380_v49, %v1379_v48  ;;  %1040 = vst [vmem:[#allocation10 + $0x10] sm:$0xff] %v1036_v44 }
 0x257   :  { %v1000_v51 = vadd.f32 %v1381_v23, %v855_v50 }
 0x259   :  { %v1010_v52 = vmax.f32 %v995_v33, %v1000_v51 }
 0x25b   :  { %1018 = vst [vmem:[#allocation3 + $0x38] sm:$0xff] %v1010_v52 }
 0x262   :  { %v1025_v53 = vld [vmem:[#allocation3 + $0x30] ss:$2 sm:$0xff]  ;;  %v1033_v54 = vld [vmem:[#allocation3 + $0x31] ss:$2 sm:$0xff] }
 0x263   :  { %v1037_v55 = vmax.f32 %v1025_v53, %v1033_v54 }
 0x265   :  { %1041 = vst [vmem:[#allocation10 + $0x18] sm:$0xff] %v1037_v55 }
 0x266   :  { %1595 = shalt.err (!%p1592_p0)
}
 0x267   :  { %s1596_s12 = scalar_lea.hbm %s1852_s5, 512 }
 0x268   :  { %p1597_p1 = scmp.ne.s32.totalorder %s1852_s5, %s1596_s12  ;;  %p1600_p2 = scmp.lt.u32.totalorder %s1596_s12, %s1852_s5 }
 0x26a   :  { %p1602_p3 = pnand %p1600_p2, %p1597_p1 }
 0x26c   :  { %1605 = shalt.err (!%p1602_p3)
}
 0x26d   :  { %1053 = dma.vmem_to_hbm [thread:$0]  %s1048_s8, 512, %s1852_s5, [#allocation6], %s1614_s30, %s1614_s30, %s1615_s6  }
 0x26e   :  { %1610 = dma.done.wait [#allocation6], 512  }
 0x26f   :  { %1611 = vsyncadd [#allocation6], 4294966784 }
 0x270   :  { %1057 = vsyncpa [#allocation5], 1 }
 0x271   :  { %1058 = vsyncpa [#allocation8], 1 }
 0x272   :  { %1059 = vsyncpa [#allocation6], 1 }

</bundles_post_ra>
